<compile_context>
chip_gen: v6e
topology: v6e:2x2x1
jax: 0.10.0
libtpu: 0.0.40
codegen_flags: <defaults>
</compile_context>

<pallas_src>
import jax
import jax.numpy as jnp
from jax import lax
from jax.experimental import pallas as pl
from jax.experimental.pallas import tpu as pltpu


# ----------------------------------------------------------------------------
# Fused forward kernel: out = relu(x @ W1 + b1) @ W2 + b2
#   x:  (B, 784)   f32   (flattened input image, NCHW flatten order)
#   W1: (784, 1024) bf16 (folded conv1∘conv2∘flatten∘fc1 weight, pre-transposed to (K, N))
#   b1: (1, 1024)  f32
#   W2: (1024, 10) f32   (fc2 weight, pre-transposed to (K, N))
#   b2: (1, 10)    f32
# ----------------------------------------------------------------------------
def _fused_forward_kernel(x_ref, w1_ref, b1_ref, w2_ref, b2_ref, o_ref):
    # FC1 (folded convs + fc1): bf16 MXU operands, f32 accumulation.
    h = jnp.dot(x_ref[...].astype(jnp.bfloat16), w1_ref[...],
                preferred_element_type=jnp.float32)            # (B, 1024) f32
    h = jnp.maximum(h + b1_ref[...], 0.0)                       # bias + ReLU in f32 (VPU)
    # FC2: tiny, keep f32.
    o = jnp.dot(h, w2_ref[...], preferred_element_type=jnp.float32)  # (B, 10)
    o_ref[...] = (o + b2_ref[...]).astype(o_ref.dtype)


def fused_forward(folded, x):
    """x: (B, in_c, H, W) -> logits (B, out_c); single fused pallas_call."""
    B = x.shape[0]
    x_flat = x.reshape(B, -1).astype(jnp.float32)   # NCHW flatten, matches fold ordering
    K1, H1 = folded["w1"].shape
    K2, OC = folded["w2"].shape
    assert x_flat.shape[1] == K1 and H1 == K2

    return pl.pallas_call(
        _fused_forward_kernel,
        out_shape=jax.ShapeDtypeStruct((B, OC), jnp.float32),
        grid=(1,),
        in_specs=[
            pl.BlockSpec((B, K1), lambda i: (0, 0)),   # x
            pl.BlockSpec((K1, H1), lambda i: (0, 0)),  # W1 (bf16, ~1.6 MB)
            pl.BlockSpec((1, H1), lambda i: (0, 0)),   # b1
            pl.BlockSpec((K2, OC), lambda i: (0, 0)),  # W2
            pl.BlockSpec((1, OC), lambda i: (0, 0)),   # b2
        ],
        out_specs=pl.BlockSpec((B, OC), lambda i: (0, 0)),
        compiler_params=pltpu.CompilerParams(
            dimension_semantics=("arbitrary",),
            vmem_limit_bytes=32 * 1024 * 1024,   # well below v7x's 64 MiB physical VMEM
        ),
    )(x_flat, folded["w1"], folded["b1"], folded["w2"], folded["b2"])


# ----------------------------------------------------------------------------
# Parameter preparation (done ONCE, outside the forward path).
# Constant-folds the two convolutions + flatten into the first Linear.
# ----------------------------------------------------------------------------
def init_params(key, in_c=1, in_w=28, in_h=28, out_c=10):
    ks = jax.random.split(key, 8)

    def uni(k, shape, fan_in):
        bound = 1.0 / (fan_in ** 0.5)
        return jax.random.uniform(k, shape, jnp.float32, -bound, bound)

    hw = (in_w - 6) * (in_h - 6) * 6
    return {
        "conv1_w": uni(ks[0], (3, in_c, 3, 3), in_c * 9),
        "conv1_b": uni(ks[1], (3,), in_c * 9),
        "conv2_w": uni(ks[2], (6, 3, 5, 5), 3 * 25),
        "conv2_b": uni(ks[3], (6,), 3 * 25),
        "fc1_w": uni(ks[4], (32 * 32, hw), hw),   # PyTorch Linear layout: (out, in)
        "fc1_b": uni(ks[5], (32 * 32,), hw),
        "fc2_w": uni(ks[6], (out_c, 32 * 32), 32 * 32),
        "fc2_b": uni(ks[7], (out_c,), 32 * 32),
    }


def fold_params(params, in_c=1, in_h=28, in_w=28):
    """Fold conv1 -> conv2 -> flatten -> fc1(linear part) into one affine map.

    flatten(conv2(conv1(x))) = A @ x_flat + c  (linear + bias), so
      fc1_pre = x_flat @ (A^T @ W1^T) + (c @ W1^T + b1) = x_flat @ W_big + b_big.
    A^T is obtained by pushing the 784 standard basis images through the conv stack.
    """
    hp = lax.Precision.HIGHEST
    c1w = params["conv1_w"].astype(jnp.float32)
    c1b = params["conv1_b"].astype(jnp.float32)
    c2w = params["conv2_w"].astype(jnp.float32)
    c2b = params["conv2_b"].astype(jnp.float32)

    def conv_flat(imgs):  # (N, in_c, H, W) -> (N, 6*22*22), PyTorch (c, h, w) flatten order
        h = lax.conv_general_dilated(imgs, c1w, (1, 1), "VALID",
                                     dimension_numbers=("NCHW", "OIHW", "NCHW"),
                                     precision=hp)
        h = h + c1b.reshape(1, -1, 1, 1)
        h = lax.conv_general_dilated(h, c2w, (1, 1), "VALID",
                                     dimension_numbers=("NCHW", "OIHW", "NCHW"),
                                     precision=hp)
        h = h + c2b.reshape(1, -1, 1, 1)
        return h.reshape(imgs.shape[0], -1)

    n_in = in_c * in_h * in_w
    c0 = conv_flat(jnp.zeros((1, in_c, in_h, in_w), jnp.float32))[0]        # (2904,)
    basis = jnp.eye(n_in, dtype=jnp.float32).reshape(n_in, in_c, in_h, in_w)
    a_t = conv_flat(basis) - c0[None, :]                                     # A^T: (784, 2904)

    w1_t = params["fc1_w"].T.astype(jnp.float32)                             # (2904, 1024)
    w_big = jnp.dot(a_t, w1_t, precision=hp)                                 # (784, 1024)
    b_big = jnp.dot(c0, w1_t, precision=hp) + params["fc1_b"]                # (1024,)

    return {
        "w1": w_big.astype(jnp.bfloat16),                 # dominant weight -> bf16 (K, N)
        "b1": b_big.reshape(1, -1).astype(jnp.float32),
        "w2": params["fc2_w"].T.astype(jnp.float32),      # (1024, 10), tiny -> keep f32
        "b2": params["fc2_b"].reshape(1, -1).astype(jnp.float32),
    }


# ----------------------------------------------------------------------------
# Pure-JAX references (for correctness checks only).
# ----------------------------------------------------------------------------
def _folded_reference(folded, x):
    """Same math as the Pallas kernel, executed with plain jnp ops."""
    xf = x.reshape(x.shape[0], -1).astype(jnp.float32)
    h = jnp.dot(xf.astype(jnp.bfloat16), folded["w1"],
                preferred_element_type=jnp.float32) + folded["b1"]
    h = jnp.maximum(h, 0.0)
    return jnp.dot(h, folded["w2"], preferred_element_type=jnp.float32) + folded["b2"]


def _original_reference(params, x):
    """f32 reference of the original module (conv -> conv -> flatten -> fc -> relu -> fc)."""
    hp = lax.Precision.HIGHEST
    h = lax.conv_general_dilated(x, params["conv1_w"], (1, 1), "VALID",
                                 dimension_numbers=("NCHW", "OIHW", "NCHW"), precision=hp)
    h = h + params["conv1_b"].reshape(1, -1, 1, 1)
    h = lax.conv_general_dilated(h, params["conv2_w"], (1, 1), "VALID",
                                 dimension_numbers=("NCHW", "OIHW", "NCHW"), precision=hp)
    h = h + params["conv2_b"].reshape(1, -1, 1, 1)
    h = h.reshape(x.shape[0], -1)
    h = jnp.maximum(jnp.dot(h, params["fc1_w"].T, precision=hp) + params["fc1_b"], 0.0)
    return jnp.dot(h, params["fc2_w"].T, precision=hp) + params["fc2_b"]


if __name__ == "__main__":
    key = jax.random.PRNGKey(0)
    pkey, xkey = jax.random.split(key)

    params = init_params(pkey)
    folded = fold_params(params)                       # one-time constant folding (prep)

    x = jax.random.normal(xkey, (2, 1, 28, 28), dtype=jnp.float32)

    out = jax.jit(fused_forward)(folded, x)
    jax.block_until_ready(out)
    assert out.shape == (2, 10), out.shape

    # Kernel correctness vs identical-math JAX (tight).
    ref_same = _folded_reference(folded, x)
    assert jnp.allclose(out, ref_same, atol=5e-3, rtol=5e-3), \
        float(jnp.max(jnp.abs(out - ref_same)))

    # Semantic fidelity vs the original (unfolded, f32) module; differences are only
    # fp-rounding from the fold + bf16 weight storage.
    ref_orig = _original_reference(params, x)
    assert jnp.allclose(out, ref_orig, atol=5e-2, rtol=5e-2), \
        float(jnp.max(jnp.abs(out - ref_orig)))

    print("KERNEL_OK")
</pallas_src>

<mosaic_0001>
module attributes {stable_mosaic.version = 11 : i64} {
  func.func @_fused_forward_kernel(%arg0: i32, %arg1: memref<2x784xf32, #tpu.memory_space<vmem>>, %arg2: memref<784x1024xbf16, #tpu.memory_space<vmem>>, %arg3: memref<1x1024xf32, #tpu.memory_space<vmem>>, %arg4: memref<1024x10xf32, #tpu.memory_space<vmem>>, %arg5: memref<1x10xf32, #tpu.memory_space<vmem>>, %arg6: memref<2x10xf32, #tpu.memory_space<vmem>>) attributes {dimension_semantics = [#tpu.dimension_semantics<arbitrary>], iteration_bounds = array<i64: 1>, scalar_prefetch = 0 : i64, scratch_operands = 0 : i64, tpu.core_type = #tpu.core_type<tc>, window_params = [{pipeline_mode = #tpu.pipeline_mode<synchronous>, transform_indices = @transform_0, window_bounds = array<i64: 2, 784>}, {pipeline_mode = #tpu.pipeline_mode<synchronous>, transform_indices = @transform_1, window_bounds = array<i64: 784, 1024>}, {pipeline_mode = #tpu.pipeline_mode<synchronous>, transform_indices = @transform_2, window_bounds = array<i64: 1, 1024>}, {pipeline_mode = #tpu.pipeline_mode<synchronous>, transform_indices = @transform_3, window_bounds = array<i64: 1024, 10>}, {pipeline_mode = #tpu.pipeline_mode<synchronous>, transform_indices = @transform_4, window_bounds = array<i64: 1, 10>}, {pipeline_mode = #tpu.pipeline_mode<synchronous>, transform_indices = @transform_5, window_bounds = array<i64: 2, 10>}]} {
    %c0 = arith.constant 0 : index
    %c0_0 = arith.constant 0 : index
    %0 = vector.load %arg1[%c0, %c0_0] : memref<2x784xf32, #tpu.memory_space<vmem>>, vector<2x784xf32>
    %1 = arith.truncf %0 : vector<2x784xf32> to vector<2x784xbf16>
    %c0_1 = arith.constant 0 : index
    %c0_2 = arith.constant 0 : index
    %2 = vector.load %arg2[%c0_1, %c0_2] : memref<784x1024xbf16, #tpu.memory_space<vmem>>, vector<784x1024xbf16>
    %cst = arith.constant dense<0.000000e+00> : vector<2x1024xf32>
    %3 = tpu.matmul %1, %2, %cst {dimension_numbers = #tpu.dot_dimension_numbers<[1], [0], [0], [1], [0, 0, 1, 1], [], []>} : vector<2x784xbf16>, vector<784x1024xbf16>, vector<2x1024xf32> -> vector<2x1024xf32>
    %c0_3 = arith.constant 0 : index
    %c0_4 = arith.constant 0 : index
    %4 = vector.load %arg3[%c0_3, %c0_4] : memref<1x1024xf32, #tpu.memory_space<vmem>>, vector<1x1024xf32>
    %5 = vector.broadcast %4 : vector<1x1024xf32> to vector<2x1024xf32>
    %6 = arith.addf %3, %5 : vector<2x1024xf32>
    %cst_5 = arith.constant 0.000000e+00 : f32
    %7 = vector.broadcast %cst_5 : f32 to vector<2x1024xf32>
    %8 = arith.maximumf %6, %7 : vector<2x1024xf32>
    %c0_6 = arith.constant 0 : index
    %c0_7 = arith.constant 0 : index
    %9 = vector.load %arg4[%c0_6, %c0_7] : memref<1024x10xf32, #tpu.memory_space<vmem>>, vector<1024x10xf32>
    %cst_8 = arith.constant dense<0.000000e+00> : vector<2x10xf32>
    %10 = tpu.matmul %8, %9, %cst_8 {dimension_numbers = #tpu.dot_dimension_numbers<[1], [0], [0], [1], [0, 0, 1, 1], [], []>} : vector<2x1024xf32>, vector<1024x10xf32>, vector<2x10xf32> -> vector<2x10xf32>
    %c0_9 = arith.constant 0 : index
    %c0_10 = arith.constant 0 : index
    %11 = vector.load %arg5[%c0_9, %c0_10] : memref<1x10xf32, #tpu.memory_space<vmem>>, vector<1x10xf32>
    %12 = vector.broadcast %11 : vector<1x10xf32> to vector<2x10xf32>
    %13 = arith.addf %10, %12 : vector<2x10xf32>
    %c0_11 = arith.constant 0 : index
    %c0_12 = arith.constant 0 : index
    %14 = vector.load %arg6[%c0_11, %c0_12] : memref<2x10xf32, #tpu.memory_space<vmem>>, vector<2x10xf32>
    tpu.vector_store %arg6[%c0_11, %c0_12], %13 {strides = array<i32>} : memref<2x10xf32, #tpu.memory_space<vmem>>, vector<2x10xf32>,
    return
  }
  func.func @transform_0(%arg0: i32) -> (i32, i32) {
    %c0_i32 = arith.constant 0 : i32
    %c0_i32_0 = arith.constant 0 : i32
    %c0_i32_1 = arith.constant 0 : i32
    return %c0_i32, %c0_i32_0 : i32, i32
  }
  func.func @transform_1(%arg0: i32) -> (i32, i32) {
    %c0_i32 = arith.constant 0 : i32
    %c0_i32_0 = arith.constant 0 : i32
    %c0_i32_1 = arith.constant 0 : i32
    return %c0_i32, %c0_i32_0 : i32, i32
  }
  func.func @transform_2(%arg0: i32) -> (i32, i32) {
    %c0_i32 = arith.constant 0 : i32
    %c0_i32_0 = arith.constant 0 : i32
    %c0_i32_1 = arith.constant 0 : i32
    return %c0_i32, %c0_i32_0 : i32, i32
  }
  func.func @transform_3(%arg0: i32) -> (i32, i32) {
    %c0_i32 = arith.constant 0 : i32
    %c0_i32_0 = arith.constant 0 : i32
    %c0_i32_1 = arith.constant 0 : i32
    return %c0_i32, %c0_i32_0 : i32, i32
  }
  func.func @transform_4(%arg0: i32) -> (i32, i32) {
    %c0_i32 = arith.constant 0 : i32
    %c0_i32_0 = arith.constant 0 : i32
    %c0_i32_1 = arith.constant 0 : i32
    return %c0_i32, %c0_i32_0 : i32, i32
  }
  func.func @transform_5(%arg0: i32) -> (i32, i32) {
    %c0_i32 = arith.constant 0 : i32
    %c0_i32_0 = arith.constant 0 : i32
    %c0_i32_1 = arith.constant 0 : i32
    return %c0_i32, %c0_i32_0 : i32, i32
  }
}

</mosaic_0001>

<bundles_post_ra>
// kernel: fused_forward.1
= control target key start
LH: loop header
LB: loop body
LE: loop exit
PB: predicated region body
PF: predicated region fallthrough
CT: control target
= control target key end

     0   :  { %10 = vsyncpa [#allocation3], 0  ;;  %s4815_s0 = inlined_call_operand.vmem [shape: f32[2,784], index: 0, kind: input, shape index: {}]   ;;  %s4816_s1 = inlined_call_operand.hbm [shape: bf16[784,1024], index: 1, kind: input, shape index: {}]   ;;  %s4817_s2 = inlined_call_operand.hbm [shape: f32[1,1024], index: 2, kind: input, shape index: {}]   ;;  %s4818_s3 = inlined_call_operand.vmem [shape: f32[1024,10], index: 3, kind: input, shape index: {}]   ;;  %s4819_s4 = inlined_call_operand.hbm [shape: f32[1,10], index: 4, kind: input, shape index: {}]   ;;  %s4820_s5 = inlined_call_operand.hbm [shape: f32[2,10], index: 5, kind: output, shape index: {}]  }
   0x1   :  { %11 = vsyncpa [#allocation6], 0 }
   0x2   :  { %12 = vsyncpa [#allocation4], 0  ;;  %s4239_s18 = smov [#allocation5]   ;;  %s4240_s20 = smov [#allocation2]  }
   0x3   :  { %s33_s19 = sshll.u32 %s4239_s18, 4  ;;  %s20_s21 = sshll.u32 %s4240_s20, 4  ;;  %s34_s19 = int_to_ptr.vmem [resolvable:$true] %s33_s19  ;;  %s21_s21 = int_to_ptr.vmem [resolvable:$true] %s20_s21 }
   0x4   :  { %s4161_s22 = scalar_lea.vmem %s34_s19, 128  ;;  %p4166_p1 = scmp.lt.s32.totalorder %s34_s19, %s34_s19 }
   0x5   :  { %p4162_p0 = scmp.ne.s32.totalorder %s34_s19, %s4161_s22  ;;  %p4167_p2 = scmp.lt.s32.totalorder %s4161_s22, %s4161_s22 }
   0x7   :  { %p4168_p3 = por %p4167_p2, %p4166_p1 }
   0x9   :  { %p4169_p4 = pnand %p4168_p3, %p4162_p0 }
   0xb   :  { %4172 = shalt.err (!%p4169_p4)
}
   0xc   :  { %36 = dma.hbm_to_vmem [thread:$0]  %s4817_s2, 128, %s34_s19, [#allocation6]  }
   0xd   :  { %s4181_s25 = scalar_lea.vmem %s21_s21, 50176  ;;  %p4186_p6 = scmp.lt.s32.totalorder %s21_s21, %s21_s21 }
   0xe   :  { %p4182_p5 = scmp.ne.s32.totalorder %s21_s21, %s4181_s25  ;;  %p4187_p7 = scmp.lt.s32.totalorder %s4181_s25, %s4181_s25 }
  0x10   :  { %p4188_p8 = por %p4187_p7, %p4186_p6 }
  0x12   :  { %p4189_p9 = pnand %p4188_p8, %p4182_p5 }
  0x14   :  { %4192 = shalt.err (!%p4189_p9)
}
  0x15   :  { %s4241_s26 = smov 512   ;;  %s4242_s27 = smov 32  }
  0x16   :  { %26 = dma.hbm_to_vmem [thread:$0]  %s4816_s1, 50176, %s21_s21, [#allocation3], %s4241_s26, %s4241_s26, %s4242_s27  }
  0x17   :  { %s4243_s30 = smov [#allocation7]  }
  0x18   :  { %s45_s6 = sshll.u32 %s4243_s30, 4  ;;  %s46_s6 = int_to_ptr.vmem [resolvable:$true] %s45_s6 }
  0x19   :  { %s4201_s7 = scalar_lea.vmem %s46_s6, 16  ;;  %s4205_s8 = scalar_lea.vmem %s46_s6, 32 }
  0x1a   :  { %p4202_p10 = scmp.ne.s32.totalorder %s46_s6, %s4201_s7  ;;  %p4206_p11 = scmp.lt.s32.totalorder %s46_s6, %s46_s6 }
  0x1b   :  { %p4207_p12 = scmp.lt.s32.totalorder %s4205_s8, %s4201_s7 }
  0x1d   :  { %p4208_p13 = por %p4207_p12, %p4206_p11 }
  0x1f   :  { %p4209_p0 = pnand %p4208_p13, %p4202_p10 }
  0x21   :  { %4212 = shalt.err (!%p4209_p0)
}
  0x22   :  { %48 = dma.hbm_to_vmem [thread:$0]  %s4819_s4, 16, %s46_s6, [#allocation6]  }
  0x23   :  { %4233 = dma.done.wait [#allocation3], 50176  }
  0x24   :  { %4234 = vsyncadd [#allocation3], 4294917120 }
  0x25   :  { %4235 = dma.done.wait [#allocation6], 144  }
  0x26   :  { %4236 = vsyncadd [#allocation6], 4294967152  ;;  %v166_v0 = vld [vmem:[#allocation2 + $0x1c0] sm:$0xff]  ;;  %v4244_v32 = vmov 1983009808   ;;  %v67_v34 = vlaneseq  ;;  %vm2504_vm0 = vcmask 130048  }
  0x27   :  { %v170_v1 = vld [vmem:[#allocation2 + $0x1e0] sm:$0xff]  ;;  %v65_v33 = vunpack.c.l.s4 %v4244_v32  ;;  %vm3587_vm1 = vcmask 74752  }
  0x28   :  { %v294_v2 = vld [vmem:[#allocation2 + $0x5c0] sm:$0xff]  ;;  %v3662_v3 = vcombine.high %v166_v0, %v170_v1  ;;  %v3661_v5 = vcombine.low %v166_v0, %v170_v1  ;;  %v4286_v44 = vshrl.u32 %v67_v34, 7 }
  0x29   :  { %v298_v4 = vld [vmem:[#allocation2 + $0x5e0] sm:$0xff]  ;;  %v66_v43 = vunpack.c.0.s8 %v65_v33 }
  0x2a   :  { %v158_v6 = vld [vmem:[#allocation2 + $0x180] sm:$0xff]  ;;  %v3790_v8 = vcombine.high %v294_v2, %v298_v4  ;;  %v3789_v9 = vcombine.low %v294_v2, %v298_v4  ;;  %2508 = vmatprep.subr.bf16.mxu0 %v3662_v3 }
  0x2b   :  { %v162_v7 = vld [vmem:[#allocation2 + $0x1a0] sm:$0xff]  ;;  %2509 = vmatpush1.bf16.msra.mxu0 %v3661_v5  ;;  %v4289_v53 = vsub.s32 %v66_v43, %v4286_v44 }
  0x2c   :  { %v3654_v10 = vcombine.high %v158_v6, %v162_v7  ;;  %v286_v11 = vld [vmem:[#allocation2 + $0x580] sm:$0xff]  ;;  %2549 = vmatprep.subr.bf16.mxu1 %v3790_v8  ;;  %v3653_v18 = vcombine.low %v158_v6, %v162_v7 }
  0x2d   :  { %v290_v12 = vld [vmem:[#allocation2 + $0x5a0] sm:$0xff]  ;;  %2550 = vmatpush1.bf16.msra.mxu1 %v3789_v9 }
  0x2e   :  { %v150_v13 = vld [vmem:[#allocation2 + $0x140] sm:$0xff]  ;;  %v3782_v14 = vcombine.high %v286_v11, %v290_v12  ;;  %2510 = vmatprep.subr.bf16.mxu0 %v3654_v10  ;;  %v3781_v19 = vcombine.low %v286_v11, %v290_v12 }
  0x2f   :  { %v154_v15 = vld [vmem:[#allocation2 + $0x160] sm:$0xff]  ;;  %2511 = vmatpush1.bf16.msra.mxu0 %v3653_v18 }
  0x30   :  { %v278_v16 = vld [vmem:[#allocation2 + $0x540] sm:$0xff]  ;;  %v3646_v20 = vcombine.high %v150_v13, %v154_v15  ;;  %2551 = vmatprep.subr.bf16.mxu1 %v3782_v14  ;;  %v3645_v26 = vcombine.low %v150_v13, %v154_v15 }
  0x31   :  { %v282_v17 = vld [vmem:[#allocation2 + $0x560] sm:$0xff]  ;;  %2552 = vmatpush1.bf16.msra.mxu1 %v3781_v19 }
  0x32   :  { %v3774_v21 = vcombine.high %v278_v16, %v282_v17  ;;  %v142_v22 = vld [vmem:[#allocation2 + $0x100] sm:$0xff]  ;;  %2512 = vmatprep.subr.bf16.mxu0 %v3646_v20  ;;  %v3773_v27 = vcombine.low %v278_v16, %v282_v17 }
  0x33   :  { %v146_v23 = vld [vmem:[#allocation2 + $0x120] sm:$0xff]  ;;  %2513 = vmatpush1.bf16.msra.mxu0 %v3645_v26 }
  0x34   :  { %v270_v24 = vld [vmem:[#allocation2 + $0x500] sm:$0xff]  ;;  %v3638_v28 = vcombine.high %v142_v22, %v146_v23  ;;  %2553 = vmatprep.subr.bf16.mxu1 %v3774_v21  ;;  %v3637_v37 = vcombine.low %v142_v22, %v146_v23 }
  0x35   :  { %v274_v25 = vld [vmem:[#allocation2 + $0x520] sm:$0xff]  ;;  %2554 = vmatpush1.bf16.msra.mxu1 %v3773_v27 }
  0x36   :  { %v3766_v29 = vcombine.high %v270_v24, %v274_v25  ;;  %v134_v30 = vld [vmem:[#allocation2 + $0xc0] sm:$0xff]  ;;  %2514 = vmatprep.subr.bf16.mxu0 %v3638_v28  ;;  %v3765_v38 = vcombine.low %v270_v24, %v274_v25 }
  0x37   :  { %v138_v31 = vld [vmem:[#allocation2 + $0xe0] sm:$0xff]  ;;  %2515 = vmatpush1.bf16.msra.mxu0 %v3637_v37 }
  0x38   :  { %v262_v35 = vld [vmem:[#allocation2 + $0x4c0] sm:$0xff]  ;;  %v3630_v39 = vcombine.high %v134_v30, %v138_v31  ;;  %2555 = vmatprep.subr.bf16.mxu1 %v3766_v29  ;;  %v3629_v47 = vcombine.low %v134_v30, %v138_v31 }
  0x39   :  { %v266_v36 = vld [vmem:[#allocation2 + $0x4e0] sm:$0xff]  ;;  %2556 = vmatpush1.bf16.msra.mxu1 %v3765_v38 }
  0x3a   :  { %v3758_v40 = vcombine.high %v262_v35, %v266_v36  ;;  %v126_v41 = vld [vmem:[#allocation2 + $0x80] sm:$0xff]  ;;  %2516 = vmatprep.subr.bf16.mxu0 %v3630_v39  ;;  %v3757_v48 = vcombine.low %v262_v35, %v266_v36 }
  0x3b   :  { %v130_v42 = vld [vmem:[#allocation2 + $0xa0] sm:$0xff]  ;;  %2517 = vmatpush1.bf16.msra.mxu0 %v3629_v47 }
  0x3c   :  { %v254_v45 = vld [vmem:[#allocation2 + $0x480] sm:$0xff]  ;;  %v3622_v49 = vcombine.high %v126_v41, %v130_v42  ;;  %2557 = vmatprep.subr.bf16.mxu1 %v3758_v40  ;;  %v3621_v56 = vcombine.low %v126_v41, %v130_v42 }
  0x3d   :  { %v258_v46 = vld [vmem:[#allocation2 + $0x4a0] sm:$0xff]  ;;  %2558 = vmatpush1.bf16.msra.mxu1 %v3757_v48 }
  0x3e   :  { %v3750_v50 = vcombine.high %v254_v45, %v258_v46  ;;  %v118_v51 = vld [vmem:[#allocation2 + $0x40] sm:$0xff]  ;;  %2518 = vmatprep.subr.bf16.mxu0 %v3622_v49  ;;  %v3749_v57 = vcombine.low %v254_v45, %v258_v46 }
  0x3f   :  { %v122_v52 = vld [vmem:[#allocation2 + $0x60] sm:$0xff]  ;;  %2519 = vmatpush1.bf16.msra.mxu0 %v3621_v56 }
  0x40   :  { %v246_v54 = vld [vmem:[#allocation2 + $0x440] sm:$0xff]  ;;  %v3614_v58 = vcombine.high %v118_v51, %v122_v52  ;;  %2559 = vmatprep.subr.bf16.mxu1 %v3750_v50  ;;  %v3613_v3 = vcombine.low %v118_v51, %v122_v52 }
  0x41   :  { %v250_v55 = vld [vmem:[#allocation2 + $0x460] sm:$0xff]  ;;  %2560 = vmatpush1.bf16.msra.mxu1 %v3749_v57 }
  0x42   :  { %v59_v59 = vld [vmem:[%s4815_s0] sm:$0xff]  ;;  %v3742_v60 = vcombine.high %v246_v54, %v250_v55  ;;  %2520 = vmatprep.subr.bf16.mxu0 %v3614_v58  ;;  %v3741_v6 = vcombine.low %v246_v54, %v250_v55 }
  0x43   :  { %v110_v61 = vld [vmem:[#allocation2] sm:$0xff]  ;;  %v4295_v63 = vrot.slane %v59_v59, %v4289_v53  ;;  %v63_v0 = vcombine.high %v59_v59, %v59_v59  ;;  %2521 = vmatpush1.bf16.msra.mxu0 %v3613_v3 }
  0x44   :  { %v114_v62 = vld [vmem:[#allocation2 + $0x20] sm:$0xff]  ;;  %2561 = vmatprep.subr.bf16.mxu1 %v3742_v60 }
  0x45   :  { %v238_v1 = vld [vmem:[#allocation2 + $0x400] sm:$0xff]  ;;  %v78_v4 = vcombine.high %v4295_v63, %v4295_v63  ;;  %v4300_v5 = vrot.slane %v63_v0, %v4289_v53  ;;  %v3606_v7 = vcombine.high %v110_v61, %v114_v62  ;;  %v3605_v15 = vcombine.low %v110_v61, %v114_v62  ;;  %2562 = vmatpush1.bf16.msra.mxu1 %v3741_v6 }
  0x46   :  { %v242_v2 = vld [vmem:[#allocation2 + $0x420] sm:$0xff] }
  0x47   :  { %v3734_v8 = vcombine.high %v238_v1, %v242_v2  ;;  %v230_v9 = vld [vmem:[#allocation2 + $0x3c0] sm:$0xff]  ;;  %v4302_v11 = vpack.c.bf16 %v78_v4, %v78_v4  ;;  %v79_v12 = vcombine.high %v4300_v5, %v4300_v5  ;;  %2522 = vmatprep.subr.bf16.mxu0 %v3606_v7  ;;  %v3733_v17 = vcombine.low %v238_v1, %v242_v2 }
  0x48   :  { %v234_v10 = vld [vmem:[#allocation2 + $0x3e0] sm:$0xff]  ;;  %2523 = vmatpush1.bf16.msra.mxu0 %v3605_v15 }
  0x49   :  { %v358_v13 = vld [vmem:[#allocation2 + $0x7c0] sm:$0xff]  ;;  %2540 = vmatprep.mubr.bf16.mxu0 %v4302_v11  ;;  %v4307_v16 = vpack.c.bf16 %v79_v12, %v79_v12  ;;  %v3726_v18 = vcombine.high %v230_v9, %v234_v10  ;;  %2563 = vmatprep.subr.bf16.mxu1 %v3734_v8  ;;  %v3725_v24 = vcombine.low %v230_v9, %v234_v10 }
  0x4a   :  { %v362_v14 = vld [vmem:[#allocation2 + $0x7e0] sm:$0xff]  ;;  %2564 = vmatpush1.bf16.msra.mxu1 %v3733_v17 }
  0x4b   :  { %v3854_v19 = vcombine.high %v358_v13, %v362_v14  ;;  %v222_v20 = vld [vmem:[#allocation2 + $0x380] sm:$0xff]  ;;  %2581 = vmatprep.mubr.bf16.mxu1 %v4307_v16  ;;  %2524 = vmatprep.subr.bf16.mxu0 %v3726_v18  ;;  %v3853_v25 = vcombine.low %v358_v13, %v362_v14 }
  0x4c   :  { %v226_v21 = vld [vmem:[#allocation2 + $0x3a0] sm:$0xff]  ;;  %2525 = vmatpush2.bf16.msra.mxu0 %v3725_v24 }
  0x4d   :  { %v350_v22 = vld [vmem:[#allocation2 + $0x780] sm:$0xff]  ;;  %v3718_v26 = vcombine.high %v222_v20, %v226_v21  ;;  %2565 = vmatprep.subr.bf16.mxu1 %v3854_v19  ;;  %v3717_v32 = vcombine.low %v222_v20, %v226_v21  ;;  %v60_v20 = vld [vmem:[%s4815_s0 + $0x8] sm:$0x3f] }
  0x4e   :  { %v354_v23 = vld [vmem:[#allocation2 + $0x7a0] sm:$0xff]  ;;  %2566 = vmatpush2.bf16.msra.mxu1 %v3853_v25 }
  0x4f   :  { %v3846_v27 = vcombine.high %v350_v22, %v354_v23  ;;  %v214_v28 = vld [vmem:[#allocation2 + $0x340] sm:$0xff]  ;;  %2526 = vmatprep.subr.bf16.mxu0 %v3718_v26  ;;  %v3845_v33 = vcombine.low %v350_v22, %v354_v23  ;;  %v4314_v23 = vrot.slane %v60_v20, %v4289_v53 }
  0x50   :  { %v218_v29 = vld [vmem:[#allocation2 + $0x360] sm:$0xff]  ;;  %2527 = vmatpush2.bf16.msra.mxu0 %v3717_v32  ;;  %v171_v32 = vld [vmem:[#allocation2 + $0x1e8] sm:$0xff] }
  0x51   :  { %v342_v30 = vld [vmem:[#allocation2 + $0x740] sm:$0xff]  ;;  %v3710_v34 = vcombine.high %v214_v28, %v218_v29  ;;  %2567 = vmatprep.subr.bf16.mxu1 %v3846_v27  ;;  %v3709_v40 = vcombine.low %v214_v28, %v218_v29 }
  0x52   :  { %v346_v31 = vld [vmem:[#allocation2 + $0x760] sm:$0xff]  ;;  %2568 = vmatpush2.bf16.msra.mxu1 %v3845_v33  ;;  %v95_v33 = vcombine.high %v4314_v23, %v4314_v23 }
  0x53   :  { %v3838_v35 = vcombine.high %v342_v30, %v346_v31  ;;  %v206_v36 = vld [vmem:[#allocation2 + $0x300] sm:$0xff]  ;;  %2528 = vmatprep.subr.bf16.mxu0 %v3710_v34  ;;  %v3837_v41 = vcombine.low %v342_v30, %v346_v31  ;;  %v4318_v30 = vpack.c.bf16 %v4295_v63, %v4295_v63  ;;  %v167_v31 = vld [vmem:[#allocation2 + $0x1c8] sm:$0xff]  ;;  %v4324_v34 = vpack.c.bf16 %v4300_v5, %v4300_v5 }
  0x54   :  { %v210_v37 = vld [vmem:[#allocation2 + $0x320] sm:$0xff]  ;;  %2529 = vmatpush2.bf16.msra.mxu0 %v3709_v40 }
  0x55   :  { %v334_v38 = vld [vmem:[#allocation2 + $0x700] sm:$0xff]  ;;  %v3702_v42 = vcombine.high %v206_v36, %v210_v37  ;;  %2569 = vmatprep.subr.bf16.mxu1 %v3838_v35  ;;  %v3701_v49 = vcombine.low %v206_v36, %v210_v37  ;;  %v80_v36 = vcombine.high %v60_v20, %v60_v20 }
  0x56   :  { %v338_v39 = vld [vmem:[#allocation2 + $0x720] sm:$0xff]  ;;  %2570 = vmatpush2.bf16.msra.mxu1 %v3837_v41  ;;  %v4327_v41 = vpack.c.bf16 %v95_v33, %v95_v33 }
  0x57   :  { %v3830_v43 = vcombine.high %v334_v38, %v338_v39  ;;  %v198_v45 = vld [vmem:[#allocation2 + $0x2c0] sm:$0xff]  ;;  %2530 = vmatprep.subr.bf16.mxu0 %v3702_v42  ;;  %v3829_v50 = vcombine.low %v334_v38, %v338_v39  ;;  %v3664_v39 = vcombine.high %v167_v31, %v171_v32  ;;  %v94_v5 = vrot.slane %v80_v36, %v4289_v53 }
  0x58   :  { %v202_v46 = vld [vmem:[#allocation2 + $0x2e0] sm:$0xff]  ;;  %2531 = vmatpush2.bf16.msra.mxu0 %v3701_v49  ;;  %v163_v49 = vld [vmem:[#allocation2 + $0x1a8] sm:$0xff] }
  0x59   :  { %v326_v47 = vld [vmem:[#allocation2 + $0x6c0] sm:$0xff]  ;;  %v3694_v51 = vcombine.high %v198_v45, %v202_v46  ;;  %2571 = vmatprep.subr.bf16.mxu1 %v3830_v43  ;;  %v3693_v58 = vcombine.low %v198_v45, %v202_v46  ;;  %v4245_v45 = vmov 0  }
  0x5a   :  { %v330_v48 = vld [vmem:[#allocation2 + $0x6e0] sm:$0xff]  ;;  %2572 = vmatpush2.bf16.msra.mxu1 %v3829_v50 }
  0x5b   :  { %v3822_v52 = vcombine.high %v326_v47, %v330_v48  ;;  %v190_v54 = vld [vmem:[#allocation2 + $0x280] sm:$0xff]  ;;  %2532 = vmatprep.subr.bf16.mxu0 %v3694_v51  ;;  %v3821_v59 = vcombine.low %v326_v47, %v330_v48  ;;  %v159_v48 = vld [vmem:[#allocation2 + $0x188] sm:$0xff]  ;;  %v4333_v51 = vpack.c.bf16 %v94_v5, %v94_v5 }
  0x5c   :  { %v194_v55 = vld [vmem:[#allocation2 + $0x2a0] sm:$0xff]  ;;  %2533 = vmatpush2.bf16.msra.mxu0 %v3693_v58  ;;  %v155_v58 = vld [vmem:[#allocation2 + $0x168] sm:$0xff] }
  0x5d   :  { %v318_v56 = vld [vmem:[#allocation2 + $0x680] sm:$0xff]  ;;  %v3686_v60 = vcombine.high %v190_v54, %v194_v55  ;;  %2573 = vmatprep.subr.bf16.mxu1 %v3822_v52  ;;  %v3685_v3 = vcombine.low %v190_v54, %v194_v55  ;;  %v3663_v52 = vcombine.low %v167_v31, %v171_v32  ;;  %v3656_v54 = vcombine.high %v159_v48, %v163_v49  ;;  %v119_v31 = vld [vmem:[#allocation2 + $0x48] sm:$0xff] }
  0x5e   :  { %v322_v57 = vld [vmem:[#allocation2 + $0x6a0] sm:$0xff]  ;;  %2574 = vmatpush2.bf16.msra.mxu1 %v3821_v59  ;;  %v123_v32 = vld [vmem:[#allocation2 + $0x68] sm:$0xff] }
  0x5f   :  { %v3814_v61 = vcombine.high %v318_v56, %v322_v57  ;;  %v182_v62 = vld [vmem:[#allocation2 + $0x240] sm:$0xff]  ;;  %2534 = vmatprep.subr.bf16.mxu0 %v3686_v60  ;;  %v3813_v4 = vcombine.low %v318_v56, %v322_v57  ;;  %v151_v57 = vld [vmem:[#allocation2 + $0x148] sm:$0xff]  ;;  %v3655_v60 = vcombine.low %v159_v48, %v163_v49  ;;  %v3615_v5 = vcombine.low %v119_v31, %v123_v32 }
  0x60   :  { %v186_v0 = vld [vmem:[#allocation2 + $0x260] sm:$0xff]  ;;  %2535 = vmatpush2.bf16.msra.mxu0 %v3685_v3  ;;  %v147_v3 = vld [vmem:[#allocation2 + $0x128] sm:$0xff] }
  0x61   :  { %v310_v1 = vld [vmem:[#allocation2 + $0x640] sm:$0xff]  ;;  %v3678_v6 = vcombine.high %v182_v62, %v186_v0  ;;  %2575 = vmatprep.subr.bf16.mxu1 %v3814_v61  ;;  %v3677_v13 = vcombine.low %v182_v62, %v186_v0  ;;  %v3648_v62 = vcombine.high %v151_v57, %v155_v58  ;;  %v231_v49 = vld [vmem:[#allocation2 + $0x3c8] sm:$0xff] }
  0x62   :  { %v314_v2 = vld [vmem:[#allocation2 + $0x660] sm:$0xff]  ;;  %2576 = vmatpush2.bf16.msra.mxu1 %v3813_v4 }
  0x63   :  { %v3806_v7 = vcombine.high %v310_v1, %v314_v2  ;;  %v174_v8 = vld [vmem:[#allocation2 + $0x200] sm:$0xff]  ;;  %2536 = vmatprep.subr.bf16.mxu0 %v3678_v6  ;;  %v3805_v14 = vcombine.low %v310_v1, %v314_v2  ;;  %v143_v2 = vld [vmem:[#allocation2 + $0x108] sm:$0xff]  ;;  %v3647_v6 = vcombine.low %v151_v57, %v155_v58 }
  0x64   :  { %v178_v9 = vld [vmem:[#allocation2 + $0x220] sm:$0xff]  ;;  %2537 = vmatpush2.bf16.msra.mxu0 %v3677_v13  ;;  %v139_v13 = vld [vmem:[#allocation2 + $0xe8] sm:$0xff] }
  0x65   :  { %v302_v10 = vld [vmem:[#allocation2 + $0x600] sm:$0xff]  ;;  %v3670_v15 = vcombine.high %v174_v8, %v178_v9  ;;  %2577 = vmatprep.subr.bf16.mxu1 %v3806_v7  ;;  %v3669_v24 = vcombine.low %v174_v8, %v178_v9  ;;  %v3640_v8 = vcombine.high %v143_v2, %v147_v3  ;;  %v223_v58 = vld [vmem:[#allocation2 + $0x388] sm:$0xff] }
  0x66   :  { %v306_v12 = vld [vmem:[#allocation2 + $0x620] sm:$0xff]  ;;  %2578 = vmatpush2.bf16.msra.mxu1 %v3805_v14 }
  0x67   :  { %v3798_v17 = vcombine.high %v302_v10, %v306_v12  ;;  %v422_v18 = vld [vmem:[#allocation2 + $0x9c0] sm:$0xff]  ;;  %2538 = vmatprep.subr.bf16.mxu0 %v3670_v15  ;;  %v3797_v25 = vcombine.low %v302_v10, %v306_v12  ;;  %v135_v12 = vld [vmem:[#allocation2 + $0xc8] sm:$0xff]  ;;  %v3639_v15 = vcombine.low %v143_v2, %v147_v3 }
  0x68   :  { %v426_v19 = vld [vmem:[#allocation2 + $0x9e0] sm:$0xff]  ;;  %2539 = vmatpush2.bf16.msra.mxu0 %v3669_v24  ;;  %v215_v3 = vld [vmem:[#allocation2 + $0x348] sm:$0xff] }
  0x69   :  { %v494_v21 = vld [vmem:[#allocation2 + $0xc00] sm:$0xff]  ;;  %v3918_v26 = vcombine.high %v422_v18, %v426_v19  ;;  %2579 = vmatprep.subr.bf16.mxu1 %v3798_v17  ;;  %v3917_v35 = vcombine.low %v422_v18, %v426_v19  ;;  %v3632_v18 = vcombine.high %v135_v12, %v139_v13 }
  0x6a   :  { %v498_v22 = vld [vmem:[#allocation2 + $0xc20] sm:$0xff]  ;;  %2580 = vmatpush2.bf16.msra.mxu1 %v3797_v25  ;;  %v3631_v25 = vcombine.low %v135_v12, %v139_v13  ;;  %v207_v13 = vld [vmem:[#allocation2 + $0x308] sm:$0xff] }
  0x6b   :  { %v3990_v27 = vcombine.high %v494_v21, %v498_v22  ;;  %v414_v28 = vld [vmem:[#allocation2 + $0x980] sm:$0xff]  ;;  %2590 = vmatprep.subr.bf16.mxu0 %v3918_v26  ;;  %v3989_v37 = vcombine.low %v494_v21, %v498_v22  ;;  %2541 = vmatmul.mubr.bf16.vlgmr.msra.gmra.mxu0 %v4318_v30  ;;  %v127_v21 = vld [vmem:[#allocation2 + $0x88] sm:$0xff] }
  0x6c   :  { %v418_v29 = vld [vmem:[#allocation2 + $0x9a0] sm:$0xff]  ;;  %2591 = vmatpush1.bf16.msra.mxu0 %v3917_v35  ;;  %2622 = vmatprep.mubr.bf16.mxu0 %v4327_v41  ;;  %v131_v22 = vld [vmem:[#allocation2 + $0xa8] sm:$0xff] }
  0x6d   :  { %v3910_v38 = vcombine.high %v414_v28, %v418_v29  ;;  %2645 = vmatprep.subr.bf16.mxu1 %v3990_v27  ;;  %v406_v63 = vld [vmem:[#allocation2 + $0x940] sm:$0xff]  ;;  %2582 = vmatmul.mubr.bf16.vlgmr.msra.gmra.mxu1 %v4324_v34  ;;  %v3909_v42 = vcombine.low %v414_v28, %v418_v29  ;;  %v3624_v27 = vcombine.high %v127_v21, %v131_v22 }
  0x6e   :  { %v410_v40 = vld [vmem:[#allocation2 + $0x960] sm:$0xff]  ;;  %2646 = vmatpush1.bf16.msra.mxu1 %v3989_v37  ;;  %2663 = vmatprep.mubr.bf16.mxu1 %v4245_v45  ;;  %v3623_v35 = vcombine.low %v127_v21, %v131_v22  ;;  %v3616_v37 = vcombine.high %v119_v31, %v123_v32  ;;  %v199_v22 = vld [vmem:[#allocation2 + $0x2c8] sm:$0xff] }
  0x6f   :  { %2592 = vmatprep.subr.bf16.mxu0 %v3910_v38  ;;  %v3902_v43 = vcombine.high %v406_v63, %v410_v40  ;;  %2672 = vmatprep.subr.bf16.mxu1 %v3664_v39  ;;  %v398_v46 = vld [vmem:[#allocation2 + $0x900] sm:$0xff]  ;;  %v3901_v50 = vcombine.low %v406_v63, %v410_v40  ;;  %v111_v63 = vld [vmem:[#allocation2 + $0x8] sm:$0xff] }
  0x70   :  { %v402_v47 = vld [vmem:[#allocation2 + $0x920] sm:$0xff]  ;;  %2593 = vmatpush1.bf16.msra.mxu0 %v3909_v42  ;;  %v115_v40 = vld [vmem:[#allocation2 + $0x28] sm:$0xff] }
  0x71   :  { %2594 = vmatprep.subr.bf16.mxu0 %v3902_v43  ;;  %v3894_v53 = vcombine.high %v398_v46, %v402_v47  ;;  %v390_v55 = vld [vmem:[#allocation2 + $0x8c0] sm:$0xff]  ;;  %v3893_v59 = vcombine.low %v398_v46, %v402_v47  ;;  %v3608_v46 = vcombine.high %v111_v63, %v115_v40  ;;  %v191_v32 = vld [vmem:[#allocation2 + $0x288] sm:$0xff] }
  0x72   :  { %v394_v56 = vld [vmem:[#allocation2 + $0x8e0] sm:$0xff] }
  0x73   :  { %v3886_v61 = vcombine.high %v390_v55, %v394_v56  ;;  %v382_v0 = vld [vmem:[#allocation2 + $0x880] sm:$0xff]  ;;  %v3885_v4 = vcombine.low %v390_v55, %v394_v56 }
  0x74   :  { %2595 = vmatpush1.bf16.msra.mxu0 %v3901_v50  ;;  %v386_v1 = vld [vmem:[#allocation2 + $0x8a0] sm:$0xff]  ;;  %v235_v50 = vld [vmem:[#allocation2 + $0x3e8] sm:$0xff] }
  0x75   :  { %3997 = vmatmul.mubr.msk.bf16.vlgmr.msra.gmra.mxu1 %vm2504_vm0, %v4333_v51  ;;  %2596 = vmatprep.subr.bf16.mxu0 %v3894_v53  ;;  %v3878_v7 = vcombine.high %v382_v0, %v386_v1  ;;  %v374_v9 = vld [vmem:[#allocation2 + $0x840] sm:$0xff]  ;;  %v3877_v14 = vcombine.low %v382_v0, %v386_v1  ;;  %v3607_v53 = vcombine.low %v111_v63, %v115_v40  ;;  %v299_v63 = vld [vmem:[#allocation2 + $0x5e8] sm:$0xff] }
  0x76   :  { %2673 = vmatpush1.bf16.msra.mxu1 %v3663_v52  ;;  %2704 = vmatprep.mubr.bf16.mxu1 %v4302_v11  ;;  %v378_v10 = vld [vmem:[#allocation2 + $0x860] sm:$0xff]  ;;  %v3728_v55 = vcombine.high %v231_v49, %v235_v50  ;;  %v183_v40 = vld [vmem:[#allocation2 + $0x248] sm:$0xff] }
  0x77   :  { %2674 = vmatprep.subr.bf16.mxu1 %v3656_v54  ;;  %v3870_v17 = vcombine.high %v374_v9, %v378_v10  ;;  %v366_v19 = vld [vmem:[#allocation2 + $0x800] sm:$0xff]  ;;  %v3869_v24 = vcombine.low %v374_v9, %v378_v10 }
  0x78   :  { %2597 = vmatpush1.bf16.msra.mxu0 %v3893_v59  ;;  %v370_v20 = vld [vmem:[#allocation2 + $0x820] sm:$0xff]  ;;  %v227_v59 = vld [vmem:[#allocation2 + $0x3a8] sm:$0xff] }
  0x79   :  { %2598 = vmatprep.subr.bf16.mxu0 %v3886_v61  ;;  %v3862_v26 = vcombine.high %v366_v19, %v370_v20  ;;  %v486_v28 = vld [vmem:[#allocation2 + $0xbc0] sm:$0xff]  ;;  %v3861_v33 = vcombine.low %v366_v19, %v370_v20  ;;  %v3727_v61 = vcombine.low %v231_v49, %v235_v50  ;;  %v3720_v0 = vcombine.high %v223_v58, %v227_v59  ;;  %v291_v49 = vld [vmem:[#allocation2 + $0x5a8] sm:$0xff] }
  0x7a   :  { %2675 = vmatpush1.bf16.msra.mxu1 %v3655_v60  ;;  %v490_v29 = vld [vmem:[#allocation2 + $0xbe0] sm:$0xff]  ;;  %v4340_v50 = vpack.c.bf16 %v4314_v23, %v4314_v23 }
  0x7b   :  { %2676 = vmatprep.subr.bf16.mxu1 %v3648_v62  ;;  %v3982_v36 = vcombine.high %v486_v28, %v490_v29  ;;  %v478_v38 = vld [vmem:[#allocation2 + $0xb80] sm:$0xff]  ;;  %v3981_v42 = vcombine.low %v486_v28, %v490_v29 }
  0x7c   :  { %2599 = vmatpush1.bf16.msra.mxu0 %v3885_v4  ;;  %v482_v39 = vld [vmem:[#allocation2 + $0xba0] sm:$0xff]  ;;  %v219_v4 = vld [vmem:[#allocation2 + $0x368] sm:$0xff] }
  0x7d   :  { %2600 = vmatprep.subr.bf16.mxu0 %v3878_v7  ;;  %v3974_v43 = vcombine.high %v478_v38, %v482_v39  ;;  %v470_v47 = vld [vmem:[#allocation2 + $0xb40] sm:$0xff]  ;;  %v3973_v52 = vcombine.low %v478_v38, %v482_v39  ;;  %v3719_v7 = vcombine.low %v223_v58, %v227_v59  ;;  %v3712_v9 = vcombine.high %v215_v3, %v219_v4  ;;  %v295_v39 = vld [vmem:[#allocation2 + $0x5c8] sm:$0xff] }
  0x7e   :  { %2677 = vmatpush1.bf16.msra.mxu1 %v3647_v6  ;;  %v474_v48 = vld [vmem:[#allocation2 + $0xb60] sm:$0xff]  ;;  %v279_v58 = vld [vmem:[#allocation2 + $0x548] sm:$0xff] }
  0x7f   :  { %2678 = vmatprep.subr.bf16.mxu1 %v3640_v8  ;;  %v3966_v54 = vcombine.high %v470_v47, %v474_v48  ;;  %v462_v56 = vld [vmem:[#allocation2 + $0xb00] sm:$0xff]  ;;  %v3965_v60 = vcombine.low %v470_v47, %v474_v48  ;;  %v287_v48 = vld [vmem:[#allocation2 + $0x588] sm:$0xff] }
  0x80   :  { %2601 = vmatpush1.bf16.msra.mxu0 %v3877_v14  ;;  %v466_v57 = vld [vmem:[#allocation2 + $0xb20] sm:$0xff]  ;;  %v211_v14 = vld [vmem:[#allocation2 + $0x328] sm:$0xff] }
  0x81   :  { %2602 = vmatprep.subr.bf16.mxu0 %v3870_v17  ;;  %v3958_v62 = vcombine.high %v462_v56, %v466_v57  ;;  %v454_v1 = vld [vmem:[#allocation2 + $0xac0] sm:$0xff]  ;;  %v3957_v6 = vcombine.low %v462_v56, %v466_v57  ;;  %v3711_v17 = vcombine.low %v215_v3, %v219_v4  ;;  %v3704_v19 = vcombine.high %v207_v13, %v211_v14  ;;  %v283_v59 = vld [vmem:[#allocation2 + $0x568] sm:$0xff] }
  0x82   :  { %2679 = vmatpush1.bf16.msra.mxu1 %v3639_v15  ;;  %v458_v2 = vld [vmem:[#allocation2 + $0xae0] sm:$0xff]  ;;  %v3784_v56 = vcombine.high %v287_v48, %v291_v49  ;;  %v275_v3 = vld [vmem:[#allocation2 + $0x528] sm:$0xff] }
  0x83   :  { %2680 = vmatprep.subr.bf16.mxu1 %v3632_v18  ;;  %v3950_v8 = vcombine.high %v454_v1, %v458_v2  ;;  %v446_v10 = vld [vmem:[#allocation2 + $0xa80] sm:$0xff]  ;;  %v3949_v15 = vcombine.low %v454_v1, %v458_v2  ;;  %v271_v2 = vld [vmem:[#allocation2 + $0x508] sm:$0xff] }
  0x84   :  { %2603 = vmatpush1.bf16.msra.mxu0 %v3869_v24  ;;  %v450_v12 = vld [vmem:[#allocation2 + $0xaa0] sm:$0xff]  ;;  %v203_v24 = vld [vmem:[#allocation2 + $0x2e8] sm:$0xff] }
  0x85   :  { %2604 = vmatprep.subr.bf16.mxu0 %v3862_v26  ;;  %v3942_v18 = vcombine.high %v446_v10, %v450_v12  ;;  %v438_v20 = vld [vmem:[#allocation2 + $0xa40] sm:$0xff]  ;;  %v3703_v26 = vcombine.low %v207_v13, %v211_v14  ;;  %v3696_v28 = vcombine.high %v199_v22, %v203_v24  ;;  %v415_v4 = vld [vmem:[#allocation2 + $0x988] sm:$0xff] }
  0x86   :  { %2681 = vmatpush1.bf16.msra.mxu1 %v3631_v25  ;;  %v442_v21 = vld [vmem:[#allocation2 + $0xa60] sm:$0xff]  ;;  %v3941_v25 = vcombine.low %v446_v10, %v450_v12  ;;  %v263_v12 = vld [vmem:[#allocation2 + $0x4c8] sm:$0xff] }
  0x87   :  { %2682 = vmatprep.subr.bf16.mxu1 %v3624_v27  ;;  %v3934_v27 = vcombine.high %v438_v20, %v442_v21  ;;  %v430_v29 = vld [vmem:[#allocation2 + $0xa00] sm:$0xff]  ;;  %v267_v13 = vld [vmem:[#allocation2 + $0x4e8] sm:$0xff] }
  0x88   :  { %2605 = vmatpush1.bf16.msra.mxu0 %v3861_v33  ;;  %v434_v31 = vld [vmem:[#allocation2 + $0xa20] sm:$0xff]  ;;  %v195_v33 = vld [vmem:[#allocation2 + $0x2a8] sm:$0xff] }
  0x89   :  { %2606 = vmatprep.subr.bf16.mxu0 %v3982_v36  ;;  %v3695_v36 = vcombine.low %v199_v22, %v203_v24  ;;  %v3688_v38 = vcombine.high %v191_v32, %v195_v33  ;;  %v407_v14 = vld [vmem:[#allocation2 + $0x948] sm:$0xff] }
  0x8a   :  { %2683 = vmatpush1.bf16.msra.mxu1 %v3623_v35  ;;  %v3933_v35 = vcombine.low %v438_v20, %v442_v21  ;;  %v255_v21 = vld [vmem:[#allocation2 + $0x488] sm:$0xff] }
  0x8b   :  { %2684 = vmatprep.subr.bf16.mxu1 %v3616_v37  ;;  %v3926_v37 = vcombine.high %v430_v29, %v434_v31  ;;  %v259_v22 = vld [vmem:[#allocation2 + $0x4a8] sm:$0xff] }
  0x8c   :  { %2607 = vmatpush2.bf16.msra.mxu0 %v3981_v42  ;;  %v187_v42 = vld [vmem:[#allocation2 + $0x268] sm:$0xff] }
  0x8d   :  { %2608 = vmatprep.subr.bf16.mxu0 %v3974_v43  ;;  %v3687_v43 = vcombine.low %v191_v32, %v195_v33  ;;  %v3680_v47 = vcombine.high %v183_v40, %v187_v42  ;;  %v399_v24 = vld [vmem:[#allocation2 + $0x908] sm:$0xff] }
  0x8e   :  { %2685 = vmatpush1.bf16.msra.mxu1 %v3615_v5  ;;  %v3925_v5 = vcombine.low %v430_v29, %v434_v31  ;;  %v247_v31 = vld [vmem:[#allocation2 + $0x448] sm:$0xff] }
  0x8f   :  { %2686 = vmatprep.subr.bf16.mxu1 %v3608_v46  ;;  %v3792_v46 = vcombine.high %v295_v39, %v299_v63  ;;  %v251_v32 = vld [vmem:[#allocation2 + $0x468] sm:$0xff] }
  0x90   :  { %2609 = vmatpush2.bf16.msra.mxu0 %v3973_v52  ;;  %v175_v52 = vld [vmem:[#allocation2 + $0x208] sm:$0xff] }
  0x91   :  { %2610 = vmatprep.subr.bf16.mxu0 %v3966_v54  ;;  %v3791_v54 = vcombine.low %v295_v39, %v299_v63  ;;  %v391_v33 = vld [vmem:[#allocation2 + $0x8c8] sm:$0xff] }
  0x92   :  { %2687 = vmatpush1.bf16.msra.mxu1 %v3607_v53  ;;  %v179_v53 = vld [vmem:[#allocation2 + $0x228] sm:$0xff] }
  0x93   :  { %2688 = vmatprep.subr.bf16.mxu1 %v3728_v55  ;;  %v3679_v55 = vcombine.low %v183_v40, %v187_v42  ;;  %v3672_v57 = vcombine.high %v175_v52, %v179_v53  ;;  %v3671_v23 = vcombine.low %v175_v52, %v179_v53  ;;  %v239_v63 = vld [vmem:[#allocation2 + $0x408] sm:$0xff] }
  0x94   :  { %2611 = vmatpush2.bf16.msra.mxu0 %v3965_v60  ;;  %v423_v60 = vld [vmem:[#allocation2 + $0x9c8] sm:$0xff] }
  0x95   :  { %2612 = vmatprep.subr.bf16.mxu0 %v3958_v62  ;;  %v3783_v62 = vcombine.low %v287_v48, %v291_v49  ;;  %v243_v40 = vld [vmem:[#allocation2 + $0x428] sm:$0xff] }
  0x96   :  { %2689 = vmatpush2.bf16.msra.mxu1 %v3727_v61  ;;  %v427_v61 = vld [vmem:[#allocation2 + $0x9e8] sm:$0xff] }
  0x97   :  { %2690 = vmatprep.subr.bf16.mxu1 %v3720_v0  ;;  %v3776_v0 = vcombine.high %v279_v58, %v283_v59  ;;  %v3920_v1 = vcombine.high %v423_v60, %v427_v61  ;;  %v383_v42 = vld [vmem:[#allocation2 + $0x888] sm:$0xff] }
  0x98   :  { %2613 = vmatpush2.bf16.msra.mxu0 %v3957_v6  ;;  %v419_v6 = vld [vmem:[#allocation2 + $0x9a8] sm:$0xff] }
  0x99   :  { %2614 = vmatprep.subr.bf16.mxu0 %v3950_v8  ;;  %v3919_v8 = vcombine.low %v423_v60, %v427_v61  ;;  %v3912_v10 = vcombine.high %v415_v4, %v419_v6  ;;  %v359_v49 = vld [vmem:[#allocation2 + $0x7c8] sm:$0xff] }
  0x9a   :  { %2691 = vmatpush2.bf16.msra.mxu1 %v3719_v7  ;;  %v3775_v7 = vcombine.low %v279_v58, %v283_v59  ;;  %v363_v52 = vld [vmem:[#allocation2 + $0x7e8] sm:$0xff] }
  0x9b   :  { %2692 = vmatprep.subr.bf16.mxu1 %v3712_v9  ;;  %v3768_v9 = vcombine.high %v271_v2, %v275_v3  ;;  %v375_v53 = vld [vmem:[#allocation2 + $0x848] sm:$0xff] }
  0x9c   :  { %2615 = vmatpush2.bf16.msra.mxu0 %v3949_v15  ;;  %v411_v15 = vld [vmem:[#allocation2 + $0x968] sm:$0xff] }
  0x9d   :  { %2616 = vmatprep.subr.bf16.mxu0 %v3942_v18  ;;  %v3911_v18 = vcombine.low %v415_v4, %v419_v6  ;;  %v3904_v20 = vcombine.high %v407_v14, %v411_v15  ;;  %v351_v59 = vld [vmem:[#allocation2 + $0x788] sm:$0xff] }
  0x9e   :  { %2693 = vmatpush2.bf16.msra.mxu1 %v3711_v17  ;;  %v3767_v17 = vcombine.low %v271_v2, %v275_v3  ;;  %v355_v60 = vld [vmem:[#allocation2 + $0x7a8] sm:$0xff] }
  0x9f   :  { %2694 = vmatprep.subr.bf16.mxu1 %v3704_v19  ;;  %v3760_v19 = vcombine.high %v263_v12, %v267_v13  ;;  %v367_v61 = vld [vmem:[#allocation2 + $0x808] sm:$0xff] }
  0xa0   :  { %2617 = vmatpush2.bf16.msra.mxu0 %v3941_v25  ;;  %v403_v25 = vld [vmem:[#allocation2 + $0x928] sm:$0xff] }
  0xa1   :  { %2618 = vmatprep.subr.bf16.mxu0 %v3934_v27  ;;  %v3903_v27 = vcombine.low %v407_v14, %v411_v15  ;;  %v3896_v29 = vcombine.high %v399_v24, %v403_v25  ;;  %v343_v3 = vld [vmem:[#allocation2 + $0x748] sm:$0xff] }
  0xa2   :  { %2695 = vmatpush2.bf16.msra.mxu1 %v3703_v26  ;;  %v3759_v26 = vcombine.low %v263_v12, %v267_v13  ;;  %v347_v4 = vld [vmem:[#allocation2 + $0x768] sm:$0xff] }
  0xa3   :  { %2696 = vmatprep.subr.bf16.mxu1 %v3696_v28  ;;  %v3752_v28 = vcombine.high %v255_v21, %v259_v22  ;;  %v487_v6 = vld [vmem:[#allocation2 + $0xbc8] sm:$0xff] }
  0xa4   :  { %2619 = vmatpush2.bf16.msra.mxu0 %v3933_v35  ;;  %v395_v35 = vld [vmem:[#allocation2 + $0x8e8] sm:$0xff] }
  0xa5   :  { %2620 = vmatprep.subr.bf16.mxu0 %v3926_v37  ;;  %v3895_v37 = vcombine.low %v399_v24, %v403_v25  ;;  %v3888_v39 = vcombine.high %v391_v33, %v395_v35  ;;  %v335_v13 = vld [vmem:[#allocation2 + $0x708] sm:$0xff] }
  0xa6   :  { %2697 = vmatpush2.bf16.msra.mxu1 %v3695_v36  ;;  %v3751_v36 = vcombine.low %v255_v21, %v259_v22  ;;  %v339_v14 = vld [vmem:[#allocation2 + $0x728] sm:$0xff] }
  0xa7   :  { %2698 = vmatprep.subr.bf16.mxu1 %v3688_v38  ;;  %v3744_v38 = vcombine.high %v247_v31, %v251_v32  ;;  %v479_v15 = vld [vmem:[#allocation2 + $0xb88] sm:$0xff] }
  0xa8   :  { %2621 = vmatpush2.bf16.msra.mxu0 %v3925_v5  ;;  %v387_v5 = vld [vmem:[#allocation2 + $0x8a8] sm:$0xff] }
  0xa9   :  { %2713 = vmatprep.subr.bf16.mxu0 %v3792_v46  ;;  %v3887_v46 = vcombine.low %v391_v33, %v395_v35  ;;  %v3880_v48 = vcombine.high %v383_v42, %v387_v5  ;;  %v327_v22 = vld [vmem:[#allocation2 + $0x6c8] sm:$0xff] }
  0xaa   :  { %2699 = vmatpush2.bf16.msra.mxu1 %v3687_v43  ;;  %v3743_v43 = vcombine.low %v247_v31, %v251_v32  ;;  %v331_v24 = vld [vmem:[#allocation2 + $0x6e8] sm:$0xff] }
  0xab   :  { %2700 = vmatprep.subr.bf16.mxu1 %v3680_v47  ;;  %2623 = vmatmul.mubr.bf16.vlgmr.msra.gmra.mxu0 %v4340_v50  ;;  %v3736_v47 = vcombine.high %v239_v63, %v243_v40  ;;  %v471_v25 = vld [vmem:[#allocation2 + $0xb48] sm:$0xff] }
  0xac   :  { %2714 = vmatpush1.bf16.msra.mxu0 %v3791_v54  ;;  %2745 = vmatprep.mubr.bf16.mxu0 %v4307_v16  ;;  %v379_v54 = vld [vmem:[#allocation2 + $0x868] sm:$0xff] }
  0xad   :  { %2715 = vmatprep.subr.bf16.mxu0 %v3784_v56  ;;  %v3879_v56 = vcombine.low %v383_v42, %v387_v5  ;;  %v3872_v58 = vcombine.high %v375_v53, %v379_v54  ;;  %v319_v32 = vld [vmem:[#allocation2 + $0x688] sm:$0xff] }
  0xae   :  { %2701 = vmatpush2.bf16.msra.mxu1 %v3679_v55  ;;  %v3735_v55 = vcombine.low %v239_v63, %v243_v40  ;;  %v323_v33 = vld [vmem:[#allocation2 + $0x6a8] sm:$0xff] }
  0xaf   :  { %2702 = vmatprep.subr.bf16.mxu1 %v3672_v57  ;;  %v3856_v57 = vcombine.high %v359_v49, %v363_v52  ;;  %v463_v35 = vld [vmem:[#allocation2 + $0xb08] sm:$0xff] }
  0xb0   :  { %2716 = vmatpush1.bf16.msra.mxu0 %v3783_v62  ;;  %v371_v62 = vld [vmem:[#allocation2 + $0x828] sm:$0xff] }
  0xb1   :  { %2717 = vmatprep.subr.bf16.mxu0 %v3776_v0  ;;  %v3871_v0 = vcombine.low %v375_v53, %v379_v54  ;;  %v3864_v2 = vcombine.high %v367_v61, %v371_v62  ;;  %v311_v40 = vld [vmem:[#allocation2 + $0x648] sm:$0xff] }
  0xb2   :  { %2703 = vmatpush2.bf16.msra.mxu1 %v3671_v23  ;;  %v3855_v23 = vcombine.low %v359_v49, %v363_v52  ;;  %v315_v42 = vld [vmem:[#allocation2 + $0x668] sm:$0xff] }
  0xb3   :  { %2754 = vmatprep.subr.bf16.mxu1 %v3920_v1  ;;  %v3848_v1 = vcombine.high %v351_v59, %v355_v60  ;;  %v455_v5 = vld [vmem:[#allocation2 + $0xac8] sm:$0xff] }
  0xb4   :  { %2718 = vmatpush1.bf16.msra.mxu0 %v3775_v7  ;;  %v491_v7 = vld [vmem:[#allocation2 + $0xbe8] sm:$0xff] }
  0xb5   :  { %2705 = vmatmul.mubr.bf16.vlgmr.msra.gmra.mxu1 %v4318_v30  ;;  %2719 = vmatprep.subr.bf16.mxu0 %v3768_v9  ;;  %v3863_v9 = vcombine.low %v367_v61, %v371_v62  ;;  %v3984_v12 = vcombine.high %v487_v6, %v491_v7  ;;  %v303_v52 = vld [vmem:[#allocation2 + $0x608] sm:$0xff] }
  0xb6   :  { %2755 = vmatpush1.bf16.msra.mxu1 %v3919_v8  ;;  %2786 = vmatprep.mubr.bf16.mxu1 %v4327_v41  ;;  %v3847_v8 = vcombine.low %v351_v59, %v355_v60  ;;  %v307_v53 = vld [vmem:[#allocation2 + $0x628] sm:$0xff] }
  0xb7   :  { %2756 = vmatprep.subr.bf16.mxu1 %v3912_v10  ;;  %v3840_v10 = vcombine.high %v343_v3, %v347_v4  ;;  %v447_v54 = vld [vmem:[#allocation2 + $0xa88] sm:$0xff] }
  0xb8   :  { %2720 = vmatpush1.bf16.msra.mxu0 %v3767_v17  ;;  %v483_v17 = vld [vmem:[#allocation2 + $0xba8] sm:$0xff] }
  0xb9   :  { %2721 = vmatprep.subr.bf16.mxu0 %v3760_v19  ;;  %v3983_v19 = vcombine.low %v487_v6, %v491_v7  ;;  %v3976_v21 = vcombine.high %v479_v15, %v483_v17  ;;  %v495_v60 = vld [vmem:[#allocation2 + $0xc08] sm:$0xff]  ;;  %v172_v6 = vld [vmem:[#allocation2 + $0x1f0] sm:$0xff] }
  0xba   :  { %2757 = vmatpush1.bf16.msra.mxu1 %v3911_v18  ;;  %v3839_v18 = vcombine.low %v343_v3, %v347_v4  ;;  %v499_v61 = vld [vmem:[#allocation2 + $0xc28] sm:$0xff]  ;;  %v168_v4 = vld [vmem:[#allocation2 + $0x1d0] sm:$0xff] }
  0xbb   :  { %2758 = vmatprep.subr.bf16.mxu1 %v3904_v20  ;;  %v3832_v20 = vcombine.high %v335_v13, %v339_v14  ;;  %v439_v62 = vld [vmem:[#allocation2 + $0xa48] sm:$0xff] }
  0xbc   :  { %2722 = vmatpush1.bf16.msra.mxu0 %v3759_v26  ;;  %v475_v26 = vld [vmem:[#allocation2 + $0xb68] sm:$0xff] }
  0xbd   :  { %2723 = vmatprep.subr.bf16.mxu0 %v3752_v28  ;;  %v3975_v28 = vcombine.low %v479_v15, %v483_v17  ;;  %v3968_v31 = vcombine.high %v471_v25, %v475_v26  ;;  %v431_v7 = vld [vmem:[#allocation2 + $0xa08] sm:$0xff]  ;;  %v300_v15 = vld [vmem:[#allocation2 + $0x5f0] sm:$0xff] }
  0xbe   :  { %2759 = vmatpush1.bf16.msra.mxu1 %v3903_v27  ;;  %v3831_v27 = vcombine.low %v335_v13, %v339_v14  ;;  %v296_v14 = vld [vmem:[#allocation2 + $0x5d0] sm:$0xff] }
  0xbf   :  { %2760 = vmatprep.subr.bf16.mxu1 %v3896_v29  ;;  %v3824_v29 = vcombine.high %v327_v22, %v331_v24 }
  0xc0   :  { %2724 = vmatpush1.bf16.msra.mxu0 %v3751_v36  ;;  %v467_v36 = vld [vmem:[#allocation2 + $0xb28] sm:$0xff] }
  0xc1   :  { %2725 = vmatprep.subr.bf16.mxu0 %v3744_v38  ;;  %v3967_v38 = vcombine.low %v471_v25, %v475_v26  ;;  %v3960_v63 = vcombine.high %v463_v35, %v467_v36  ;;  %v3793_v25 = vcombine.low %v296_v14, %v300_v15 }
  0xc2   :  { %2761 = vmatpush1.bf16.msra.mxu1 %v3895_v37  ;;  %v3823_v37 = vcombine.low %v327_v22, %v331_v24  ;;  %v292_v22 = vld [vmem:[#allocation2 + $0x5b0] sm:$0xff]  ;;  %v3665_v24 = vcombine.low %v168_v4, %v172_v6 }
  0xc3   :  { %2762 = vmatprep.subr.bf16.mxu1 %v3888_v39  ;;  %v3816_v39 = vcombine.high %v319_v32, %v323_v33 }
  0xc4   :  { %2726 = vmatpush1.bf16.msra.mxu0 %v3743_v43  ;;  %v459_v43 = vld [vmem:[#allocation2 + $0xae8] sm:$0xff] }
  0xc5   :  { %2727 = vmatprep.subr.bf16.mxu0 %v3736_v47  ;;  %v3959_v47 = vcombine.low %v463_v35, %v467_v36  ;;  %v3952_v49 = vcombine.high %v455_v5, %v459_v43 }
  0xc6   :  { %2763 = vmatpush1.bf16.msra.mxu1 %v3887_v46  ;;  %v3815_v46 = vcombine.low %v319_v32, %v323_v33  ;;  %v284_v32 = vld [vmem:[#allocation2 + $0x570] sm:$0xff] }
  0xc7   :  { %2764 = vmatprep.subr.bf16.mxu1 %v3880_v48  ;;  %v3808_v48 = vcombine.high %v311_v40, %v315_v42 }
  0xc8   :  { %2728 = vmatpush1.bf16.msra.mxu0 %v3735_v55  ;;  %v451_v55 = vld [vmem:[#allocation2 + $0xaa8] sm:$0xff] }
  0xc9   :  { %2729 = vmatprep.subr.bf16.mxu0 %v3856_v57  ;;  %v3951_v57 = vcombine.low %v455_v5, %v459_v43  ;;  %v3944_v59 = vcombine.high %v447_v54, %v451_v55 }
  0xca   :  { %2765 = vmatpush1.bf16.msra.mxu1 %v3879_v56  ;;  %v3807_v56 = vcombine.low %v311_v40, %v315_v42  ;;  %v276_v40 = vld [vmem:[#allocation2 + $0x530] sm:$0xff] }
  0xcb   :  { %2766 = vmatprep.subr.bf16.mxu1 %v3872_v58  ;;  %v3800_v58 = vcombine.high %v303_v52, %v307_v53 }
  0xcc   :  { %2730 = vmatpush2.bf16.msra.mxu0 %v3855_v23  ;;  %v443_v23 = vld [vmem:[#allocation2 + $0xa68] sm:$0xff] }
  0xcd   :  { %2731 = vmatprep.subr.bf16.mxu0 %v3848_v1  ;;  %v3943_v1 = vcombine.low %v447_v54, %v451_v55  ;;  %v3936_v3 = vcombine.high %v439_v62, %v443_v23 }
  0xce   :  { %2767 = vmatpush1.bf16.msra.mxu1 %v3871_v0  ;;  %v3799_v0 = vcombine.low %v303_v52, %v307_v53  ;;  %v268_v52 = vld [vmem:[#allocation2 + $0x4f0] sm:$0xff] }
  0xcf   :  { %2768 = vmatprep.subr.bf16.mxu1 %v3864_v2  ;;  %v3992_v2 = vcombine.high %v495_v60, %v499_v61 }
  0xd0   :  { %2732 = vmatpush2.bf16.msra.mxu0 %v3847_v8  ;;  %v435_v8 = vld [vmem:[#allocation2 + $0xa28] sm:$0xff] }
  0xd1   :  { %2733 = vmatprep.subr.bf16.mxu0 %v3840_v10  ;;  %v3935_v10 = vcombine.low %v439_v62, %v443_v23  ;;  %v3928_v13 = vcombine.high %v431_v7, %v435_v8  ;;  %v3927_v17 = vcombine.low %v431_v7, %v435_v8 }
  0xd2   :  { %2769 = vmatpush1.bf16.msra.mxu1 %v3863_v9  ;;  %v3991_v9 = vcombine.low %v495_v60, %v499_v61  ;;  %v260_v60 = vld [vmem:[#allocation2 + $0x4b0] sm:$0xff] }
  0xd3   :  { %2770 = vmatprep.subr.bf16.mxu1 %v3984_v12  ;;  %v3666_v12 = vcombine.high %v168_v4, %v172_v6  ;;  %v252_v4 = vld [vmem:[#allocation2 + $0x470] sm:$0xff] }
  0xd4   :  { %2734 = vmatpush2.bf16.msra.mxu0 %v3839_v18  ;;  %v3794_v18 = vcombine.high %v296_v14, %v300_v15  ;;  %v244_v14 = vld [vmem:[#allocation2 + $0x430] sm:$0xff] }
  0xd5   :  { %2735 = vmatprep.subr.bf16.mxu0 %v3832_v20  ;;  %v164_v20 = vld [vmem:[#allocation2 + $0x1b0] sm:$0xff] }
  0xd6   :  { %2771 = vmatpush2.bf16.msra.mxu1 %v3983_v19  ;;  %v160_v19 = vld [vmem:[#allocation2 + $0x190] sm:$0xff] }
  0xd7   :  { %2772 = vmatprep.subr.bf16.mxu1 %v3976_v21  ;;  %v288_v21 = vld [vmem:[#allocation2 + $0x590] sm:$0xff]  ;;  %v3658_v26 = vcombine.high %v160_v19, %v164_v20  ;;  %v3657_v33 = vcombine.low %v160_v19, %v164_v20 }
  0xd8   :  { %2736 = vmatpush2.bf16.msra.mxu0 %v3831_v27  ;;  %v3786_v27 = vcombine.high %v288_v21, %v292_v22  ;;  %v3785_v35 = vcombine.low %v288_v21, %v292_v22  ;;  %v232_v20 = vld [vmem:[#allocation2 + $0x3d0] sm:$0xff] }
  0xd9   :  { %2737 = vmatprep.subr.bf16.mxu0 %v3824_v29  ;;  %v156_v29 = vld [vmem:[#allocation2 + $0x170] sm:$0xff] }
  0xda   :  { %2773 = vmatpush2.bf16.msra.mxu1 %v3975_v28  ;;  %v152_v28 = vld [vmem:[#allocation2 + $0x150] sm:$0xff] }
  0xdb   :  { %2774 = vmatprep.subr.bf16.mxu1 %v3968_v31  ;;  %v280_v31 = vld [vmem:[#allocation2 + $0x550] sm:$0xff]  ;;  %v3650_v36 = vcombine.high %v152_v28, %v156_v29  ;;  %v3649_v42 = vcombine.low %v152_v28, %v156_v29 }
  0xdc   :  { %2738 = vmatpush2.bf16.msra.mxu0 %v3823_v37  ;;  %v3778_v37 = vcombine.high %v280_v31, %v284_v32  ;;  %v3777_v5 = vcombine.low %v280_v31, %v284_v32  ;;  %v236_v21 = vld [vmem:[#allocation2 + $0x3f0] sm:$0xff] }
  0xdd   :  { %2739 = vmatprep.subr.bf16.mxu0 %v3816_v39  ;;  %v148_v39 = vld [vmem:[#allocation2 + $0x130] sm:$0xff] }
  0xde   :  { %2775 = vmatpush2.bf16.msra.mxu1 %v3967_v38  ;;  %v144_v38 = vld [vmem:[#allocation2 + $0x110] sm:$0xff] }
  0xdf   :  { %2776 = vmatprep.subr.bf16.mxu1 %v3960_v63  ;;  %v272_v63 = vld [vmem:[#allocation2 + $0x510] sm:$0xff]  ;;  %v3642_v43 = vcombine.high %v144_v38, %v148_v39  ;;  %v3641_v53 = vcombine.low %v144_v38, %v148_v39 }
  0xe0   :  { %2740 = vmatpush2.bf16.msra.mxu0 %v3815_v46  ;;  %v3770_v46 = vcombine.high %v272_v63, %v276_v40  ;;  %v3769_v54 = vcombine.low %v272_v63, %v276_v40  ;;  %v360_v22 = vld [vmem:[#allocation2 + $0x7d0] sm:$0xff] }
  0xe1   :  { %2741 = vmatprep.subr.bf16.mxu0 %v3808_v48  ;;  %v140_v48 = vld [vmem:[#allocation2 + $0xf0] sm:$0xff] }
  0xe2   :  { %2777 = vmatpush2.bf16.msra.mxu1 %v3959_v47  ;;  %v136_v47 = vld [vmem:[#allocation2 + $0xd0] sm:$0xff] }
  0xe3   :  { %2778 = vmatprep.subr.bf16.mxu1 %v3952_v49  ;;  %v264_v49 = vld [vmem:[#allocation2 + $0x4d0] sm:$0xff]  ;;  %v3634_v55 = vcombine.high %v136_v47, %v140_v48  ;;  %v3633_v61 = vcombine.low %v136_v47, %v140_v48 }
  0xe4   :  { %2742 = vmatpush2.bf16.msra.mxu0 %v3807_v56  ;;  %v3762_v56 = vcombine.high %v264_v49, %v268_v52  ;;  %v3761_v62 = vcombine.low %v264_v49, %v268_v52  ;;  %v224_v29 = vld [vmem:[#allocation2 + $0x390] sm:$0xff] }
  0xe5   :  { %2743 = vmatprep.subr.bf16.mxu0 %v3800_v58  ;;  %v132_v58 = vld [vmem:[#allocation2 + $0xb0] sm:$0xff] }
  0xe6   :  { %2779 = vmatpush2.bf16.msra.mxu1 %v3951_v57  ;;  %v128_v57 = vld [vmem:[#allocation2 + $0x90] sm:$0xff] }
  0xe7   :  { %2780 = vmatprep.subr.bf16.mxu1 %v3944_v59  ;;  %v256_v59 = vld [vmem:[#allocation2 + $0x490] sm:$0xff]  ;;  %v3626_v23 = vcombine.high %v128_v57, %v132_v58  ;;  %v3625_v6 = vcombine.low %v128_v57, %v132_v58 }
  0xe8   :  { %2744 = vmatpush2.bf16.msra.mxu0 %v3799_v0  ;;  %v3754_v0 = vcombine.high %v256_v59, %v260_v60  ;;  %v3753_v7 = vcombine.low %v256_v59, %v260_v60  ;;  %v228_v31 = vld [vmem:[#allocation2 + $0x3b0] sm:$0xff] }
  0xe9   :  { %2809 = vmatprep.subr.bf16.mxu0 %v3992_v2  ;;  %v124_v2 = vld [vmem:[#allocation2 + $0x70] sm:$0xff] }
  0xea   :  { %2781 = vmatpush2.bf16.msra.mxu1 %v3943_v1  ;;  %v120_v1 = vld [vmem:[#allocation2 + $0x50] sm:$0xff] }
  0xeb   :  { %2782 = vmatprep.subr.bf16.mxu1 %v3936_v3  ;;  %2746 = vmatmul.mubr.bf16.vlgmr.msra.gmra.mxu0 %v4324_v34  ;;  %v248_v3 = vld [vmem:[#allocation2 + $0x450] sm:$0xff]  ;;  %v3618_v8 = vcombine.high %v120_v1, %v124_v2  ;;  %v3617_v15 = vcombine.low %v120_v1, %v124_v2 }
  0xec   :  { %2810 = vmatpush1.bf16.msra.mxu0 %v3991_v9  ;;  %2827 = vmatprep.mubr.bf16.mxu0 %v4245_v45  ;;  %v3746_v9 = vcombine.high %v248_v3, %v252_v4  ;;  %v352_v32 = vld [vmem:[#allocation2 + $0x790] sm:$0xff] }
  0xed   :  { %2836 = vmatprep.subr.bf16.mxu0 %v3666_v12  ;;  %v116_v12 = vld [vmem:[#allocation2 + $0x30] sm:$0xff] }
  0xee   :  { %2783 = vmatpush2.bf16.msra.mxu1 %v3935_v10  ;;  %v112_v10 = vld [vmem:[#allocation2 + $0x10] sm:$0xff] }
  0xef   :  { %2784 = vmatprep.subr.bf16.mxu1 %v3928_v13  ;;  %v240_v13 = vld [vmem:[#allocation2 + $0x410] sm:$0xff] }
  0xf0   :  { %v3738_v19 = vcombine.high %v240_v13, %v244_v14  ;;  %v216_v39 = vld [vmem:[#allocation2 + $0x350] sm:$0xff] }
  0xf1   :  { %v220_v63 = vld [vmem:[#allocation2 + $0x370] sm:$0xff] }
  0xf2   :  { %2785 = vmatpush2.bf16.msra.mxu1 %v3927_v17  ;;  %v3745_v17 = vcombine.low %v248_v3, %v252_v4  ;;  %v344_v40 = vld [vmem:[#allocation2 + $0x750] sm:$0xff] }
  0xf3   :  { %2877 = vmatprep.subr.bf16.mxu1 %v3794_v18  ;;  %3998 = vmatmul.mubr.msk.bf16.vlgmr.msra.gmra.mxu0 %vm2504_vm0, %v4333_v51  ;;  %v3610_v18 = vcombine.high %v112_v10, %v116_v12  ;;  %v208_v48 = vld [vmem:[#allocation2 + $0x310] sm:$0xff] }
  0xf4   :  { %2837 = vmatpush1.bf16.msra.mxu0 %v3665_v24  ;;  %2868 = vmatprep.mubr.bf16.mxu0 %v4302_v11  ;;  %v364_v24 = vld [vmem:[#allocation2 + $0x7f0] sm:$0xff] }
  0xf5   :  { %2787 = vmatmul.mubr.bf16.vlgmr.msra.gmra.mxu1 %v4340_v50  ;;  %2838 = vmatprep.subr.bf16.mxu0 %v3658_v26  ;;  %v3737_v26 = vcombine.low %v240_v13, %v244_v14  ;;  %v3858_v28 = vcombine.high %v360_v22, %v364_v24  ;;  %v212_v49 = vld [vmem:[#allocation2 + $0x330] sm:$0xff] }
  0xf6   :  { %2878 = vmatpush1.bf16.msra.mxu1 %v3793_v25  ;;  %2909 = vmatprep.mubr.bf16.mxu1 %v4307_v16  ;;  %v3609_v25 = vcombine.low %v112_v10, %v116_v12  ;;  %v336_v52 = vld [vmem:[#allocation2 + $0x710] sm:$0xff] }
  0xf7   :  { %2879 = vmatprep.subr.bf16.mxu1 %v3786_v27  ;;  %v3730_v27 = vcombine.high %v232_v20, %v236_v21  ;;  %v200_v58 = vld [vmem:[#allocation2 + $0x2d0] sm:$0xff] }
  0xf8   :  { %2839 = vmatpush1.bf16.msra.mxu0 %v3657_v33  ;;  %v356_v33 = vld [vmem:[#allocation2 + $0x7b0] sm:$0xff] }
  0xf9   :  { %2840 = vmatprep.subr.bf16.mxu0 %v3650_v36  ;;  %v3857_v36 = vcombine.low %v360_v22, %v364_v24  ;;  %v3850_v38 = vcombine.high %v352_v32, %v356_v33  ;;  %v204_v59 = vld [vmem:[#allocation2 + $0x2f0] sm:$0xff]  ;;  %v510_v24 = vsub.s32 1, %v4286_v44 }
  0xfa   :  { %2880 = vmatpush1.bf16.msra.mxu1 %v3785_v35  ;;  %v3729_v35 = vcombine.low %v232_v20, %v236_v21  ;;  %v328_v60 = vld [vmem:[#allocation2 + $0x6d0] sm:$0xff]  ;;  %v4354_v21 = vld [vmem:[#allocation5] sm:$0xff] }
  0xfb   :  { %2881 = vmatprep.subr.bf16.mxu1 %v3778_v37  ;;  %v3722_v37 = vcombine.high %v224_v29, %v228_v31  ;;  %v192_v2 = vld [vmem:[#allocation2 + $0x290] sm:$0xff] }
  0xfc   :  { %2841 = vmatpush1.bf16.msra.mxu0 %v3649_v42  ;;  %v348_v42 = vld [vmem:[#allocation2 + $0x770] sm:$0xff] }
  0xfd   :  { %2842 = vmatprep.subr.bf16.mxu0 %v3642_v43  ;;  %v3849_v43 = vcombine.low %v352_v32, %v356_v33  ;;  %v3842_v47 = vcombine.high %v344_v40, %v348_v42  ;;  %v196_v3 = vld [vmem:[#allocation2 + $0x2b0] sm:$0xff] }
  0xfe   :  { %2882 = vmatpush1.bf16.msra.mxu1 %v3777_v5  ;;  %v3721_v5 = vcombine.low %v224_v29, %v228_v31  ;;  %v320_v4 = vld [vmem:[#allocation2 + $0x690] sm:$0xff] }
  0xff   :  { %2883 = vmatprep.subr.bf16.mxu1 %v3770_v46  ;;  %v3714_v46 = vcombine.high %v216_v39, %v220_v63  ;;  %v184_v12 = vld [vmem:[#allocation2 + $0x250] sm:$0xff] }
 0x100   :  { %2843 = vmatpush1.bf16.msra.mxu0 %v3641_v53  ;;  %v340_v53 = vld [vmem:[#allocation2 + $0x730] sm:$0xff] }
 0x101   :  { %2844 = vmatprep.subr.bf16.mxu0 %v3634_v55  ;;  %v3841_v55 = vcombine.low %v344_v40, %v348_v42  ;;  %v3834_v57 = vcombine.high %v336_v52, %v340_v53  ;;  %v188_v13 = vld [vmem:[#allocation2 + $0x270] sm:$0xff] }
 0x102   :  { %2884 = vmatpush1.bf16.msra.mxu1 %v3769_v54  ;;  %v3713_v54 = vcombine.low %v216_v39, %v220_v63  ;;  %v312_v14 = vld [vmem:[#allocation2 + $0x650] sm:$0xff]  ;;  %v3682_v20 = vcombine.high %v184_v12, %v188_v13  ;;  %v3681_v29 = vcombine.low %v184_v12, %v188_v13 }
 0x103   :  { %2885 = vmatprep.subr.bf16.mxu1 %v3762_v56  ;;  %v3706_v56 = vcombine.high %v208_v48, %v212_v49  ;;  %v496_v63 = vld [vmem:[#allocation2 + $0xc10] sm:$0xff] }
 0x104   :  { %2845 = vmatpush1.bf16.msra.mxu0 %v3633_v61  ;;  %v332_v61 = vld [vmem:[#allocation2 + $0x6f0] sm:$0xff] }
 0x105   :  { %2846 = vmatprep.subr.bf16.mxu0 %v3626_v23  ;;  %v3833_v23 = vcombine.low %v336_v52, %v340_v53  ;;  %v3826_v1 = vcombine.high %v328_v60, %v332_v61  ;;  %v500_v40 = vld [vmem:[#allocation2 + $0xc30] sm:$0xff] }
 0x106   :  { %2886 = vmatpush1.bf16.msra.mxu1 %v3761_v62  ;;  %v3705_v62 = vcombine.low %v208_v48, %v212_v49  ;;  %v400_v12 = vld [vmem:[#allocation2 + $0x910] sm:$0xff] }
 0x107   :  { %2887 = vmatprep.subr.bf16.mxu1 %v3754_v0  ;;  %v3698_v0 = vcombine.high %v200_v58, %v204_v59  ;;  %v404_v13 = vld [vmem:[#allocation2 + $0x930] sm:$0xff] }
 0x108   :  { %2847 = vmatpush1.bf16.msra.mxu0 %v3625_v6  ;;  %v324_v6 = vld [vmem:[#allocation2 + $0x6b0] sm:$0xff] }
 0x109   :  { %2848 = vmatprep.subr.bf16.mxu0 %v3618_v8  ;;  %v3825_v8 = vcombine.low %v328_v60, %v332_v61  ;;  %v3818_v10 = vcombine.high %v320_v4, %v324_v6 }
 0x10a   :  { %2888 = vmatpush1.bf16.msra.mxu1 %v3753_v7  ;;  %v3697_v7 = vcombine.low %v200_v58, %v204_v59  ;;  %v169_v58 = vld [vmem:[#allocation2 + $0x1d8] sm:$0xff] }
 0x10b   :  { %2889 = vmatprep.subr.bf16.mxu1 %v3746_v9  ;;  %v3690_v9 = vcombine.high %v192_v2, %v196_v3  ;;  %v173_v59 = vld [vmem:[#allocation2 + $0x1f8] sm:$0xff] }
 0x10c   :  { %2849 = vmatpush1.bf16.msra.mxu0 %v3617_v15  ;;  %v316_v15 = vld [vmem:[#allocation2 + $0x670] sm:$0xff] }
 0x10d   :  { %2850 = vmatprep.subr.bf16.mxu0 %v3610_v18  ;;  %v506_v18 = vsub.s32 0, %v4286_v44  ;;  %v3810_v22 = vcombine.high %v312_v14, %v316_v15  ;;  %v3809_v32 = vcombine.low %v312_v14, %v316_v15  ;;  %v161_v14 = vld [vmem:[#allocation2 + $0x198] sm:$0xff] }
 0x10e   :  { %2890 = vmatpush1.bf16.msra.mxu1 %v3745_v17  ;;  %v3689_v17 = vcombine.low %v192_v2, %v196_v3  ;;  %v3668_v3 = vcombine.high %v169_v58, %v173_v59  ;;  %v165_v15 = vld [vmem:[#allocation2 + $0x1b8] sm:$0xff] }
 0x10f   :  { %2891 = vmatprep.subr.bf16.mxu1 %v3738_v19  ;;  %v3817_v19 = vcombine.low %v320_v4, %v324_v6  ;;  %v507_v31 = vrot.slane %v4354_v21, %v506_v18  ;;  %v408_v4 = vld [vmem:[#allocation2 + $0x950] sm:$0xff] }
 0x110   :  { %2851 = vmatpush1.bf16.msra.mxu0 %v3609_v25  ;;  %v176_v25 = vld [vmem:[#allocation2 + $0x210] sm:$0xff] }
 0x111   :  { %2852 = vmatprep.subr.bf16.mxu0 %v3730_v27  ;;  %v304_v27 = vld [vmem:[#allocation2 + $0x610] sm:$0xff] }
 0x112   :  { %2892 = vmatpush1.bf16.msra.mxu1 %v3737_v26  ;;  %v180_v26 = vld [vmem:[#allocation2 + $0x230] sm:$0xff] }
 0x113   :  { %2893 = vmatprep.subr.bf16.mxu1 %v3858_v28  ;;  %v308_v28 = vld [vmem:[#allocation2 + $0x630] sm:$0xff]  ;;  %v3674_v33 = vcombine.high %v176_v25, %v180_v26 }
 0x114   :  { %2853 = vmatpush2.bf16.msra.mxu0 %v3729_v35  ;;  %v511_v35 = vrot.slane %v4354_v21, %v510_v24  ;;  %v412_v6 = vld [vmem:[#allocation2 + $0x970] sm:$0xff]  ;;  %v3660_v24 = vcombine.high %v161_v14, %v165_v15 }
 0x115   :  { %2854 = vmatprep.subr.bf16.mxu0 %v3722_v37  ;;  %v424_v37 = vld [vmem:[#allocation2 + $0x9d0] sm:$0xff]  ;;  %v3905_v18 = vcombine.low %v408_v4, %v412_v6 }
 0x116   :  { %2894 = vmatpush2.bf16.msra.mxu1 %v3857_v36  ;;  %v3802_v36 = vcombine.high %v304_v27, %v308_v28 }
 0x117   :  { %2895 = vmatprep.subr.bf16.mxu1 %v3850_v38  ;;  %v428_v38 = vld [vmem:[#allocation2 + $0x9f0] sm:$0xff] }
 0x118   :  { %2855 = vmatpush2.bf16.msra.mxu0 %v3721_v5  ;;  %v3922_v48 = vcombine.high %v424_v37, %v428_v38 }
 0x119   :  { %2856 = vmatprep.subr.bf16.mxu0 %v3714_v46 }
 0x11a   :  { %2896 = vmatpush2.bf16.msra.mxu1 %v3849_v43  ;;  %v3673_v43 = vcombine.low %v176_v25, %v180_v26  ;;  %v392_v25 = vld [vmem:[#allocation2 + $0x8d0] sm:$0xff] }
 0x11b   :  { %2897 = vmatprep.subr.bf16.mxu1 %v3842_v47  ;;  %v3801_v47 = vcombine.low %v304_v27, %v308_v28  ;;  %v396_v26 = vld [vmem:[#allocation2 + $0x8f0] sm:$0xff]  ;;  %v153_v27 = vld [vmem:[#allocation2 + $0x158] sm:$0xff] }
 0x11c   :  { %2857 = vmatpush2.bf16.msra.mxu0 %v3713_v54  ;;  %v3994_v54 = vcombine.high %v496_v63, %v500_v40  ;;  %v157_v28 = vld [vmem:[#allocation2 + $0x178] sm:$0xff] }
 0x11d   :  { %2858 = vmatprep.subr.bf16.mxu0 %v3706_v56  ;;  %v420_v56 = vld [vmem:[#allocation2 + $0x9b0] sm:$0xff] }
 0x11e   :  { %2898 = vmatpush2.bf16.msra.mxu1 %v3841_v55  ;;  %v416_v55 = vld [vmem:[#allocation2 + $0x990] sm:$0xff] }
 0x11f   :  { %2899 = vmatprep.subr.bf16.mxu1 %v3834_v57 }
 0x120   :  { %2859 = vmatpush2.bf16.msra.mxu0 %v3705_v62  ;;  %v3921_v62 = vcombine.low %v424_v37, %v428_v38  ;;  %v145_v37 = vld [vmem:[#allocation2 + $0x118] sm:$0xff] }
 0x121   :  { %2860 = vmatprep.subr.bf16.mxu0 %v3698_v0  ;;  %v3993_v0 = vcombine.low %v496_v63, %v500_v40  ;;  %v149_v38 = vld [vmem:[#allocation2 + $0x138] sm:$0xff]  ;;  %v3651_v63 = vcombine.low %v153_v27, %v157_v28 }
 0x122   :  { %2900 = vmatpush2.bf16.msra.mxu1 %v3833_v23 }
 0x123   :  { %2901 = vmatprep.subr.bf16.mxu1 %v3826_v1  ;;  %v3914_v1 = vcombine.high %v416_v55, %v420_v56 }
 0x124   :  { %2861 = vmatpush2.bf16.msra.mxu0 %v3697_v7 }
 0x125   :  { %2862 = vmatprep.subr.bf16.mxu0 %v3690_v9  ;;  %v3906_v9 = vcombine.high %v408_v4, %v412_v6 }
 0x126   :  { %2902 = vmatpush2.bf16.msra.mxu1 %v3825_v8  ;;  %v3913_v8 = vcombine.low %v416_v55, %v420_v56  ;;  %v372_v55 = vld [vmem:[#allocation2 + $0x830] sm:$0xff]  ;;  %v129_v56 = vld [vmem:[#allocation2 + $0x98] sm:$0xff] }
 0x127   :  { %2903 = vmatprep.subr.bf16.mxu1 %v3818_v10 }
 0x128   :  { %2863 = vmatpush2.bf16.msra.mxu0 %v3689_v17 }
 0x129   :  { %2864 = vmatprep.subr.bf16.mxu0 %v3682_v20  ;;  %v3898_v20 = vcombine.high %v400_v12, %v404_v13 }
 0x12a   :  { %2904 = vmatpush2.bf16.msra.mxu1 %v3817_v19  ;;  %v3667_v19 = vcombine.low %v169_v58, %v173_v59 }
 0x12b   :  { %2905 = vmatprep.subr.bf16.mxu1 %v3810_v22  ;;  %v2542_v39 = vpop.f32.mrf.mxu0 }
 0x12c   :  { %v2543_v42 = vadd.f32 %v2542_v39, %v507_v31  ;;  %2865 = vmatpush2.bf16.msra.mxu0 %v3681_v29  ;;  %v3897_v29 = vcombine.low %v400_v12, %v404_v13  ;;  %v3659_v31 = vcombine.low %v161_v14, %v165_v15  ;;  %v3889_v39 = vcombine.low %v392_v25, %v396_v26  ;;  %v484_v12 = vld [vmem:[#allocation2 + $0xbb0] sm:$0xff]  ;;  %v113_v13 = vld [vmem:[#allocation2 + $0x18] sm:$0xff] }
 0x12d   :  { %v2583_v5 = vpop.f32.mrf.mxu1  ;;  %v2544_v46 = vpop.f32.mrf.mxu0  ;;  %2866 = vmatprep.subr.bf16.mxu0 %v3674_v33  ;;  %v3652_v33 = vcombine.high %v153_v27, %v157_v28  ;;  %v117_v14 = vld [vmem:[#allocation2 + $0x38] sm:$0xff] }
 0x12e   :  { %2906 = vmatpush2.bf16.msra.mxu1 %v3809_v32  ;;  %v4359_v49 = vadd.f32 %v2583_v5, %v2543_v42  ;;  %v2545_v52 = vadd.f32 %v2544_v46, %v511_v35  ;;  %v3890_v32 = vcombine.high %v392_v25, %v396_v26  ;;  %v384_v35 = vld [vmem:[#allocation2 + $0x890] sm:$0xff]  ;;  %v3644_v42 = vcombine.high %v145_v37, %v149_v38  ;;  %v137_v46 = vld [vmem:[#allocation2 + $0xd8] sm:$0xff] }
 0x12f   :  { %v2585_v53 = vpop.f32.mrf.mxu1  ;;  %2907 = vmatprep.subr.bf16.mxu1 %v3802_v36  ;;  %v2546_v57 = vpop.f32.mrf.mxu0  ;;  %v388_v36 = vld [vmem:[#allocation2 + $0x8b0] sm:$0xff]  ;;  %v237_v25 = vld [vmem:[#allocation2 + $0x3f8] sm:$0xff]  ;;  %v3611_v27 = vcombine.low %v113_v13, %v117_v14 }
 0x130   :  { %v4361_v60 = vadd.f32 %v2585_v53, %v2545_v52  ;;  %2867 = vmatpush2.bf16.msra.mxu0 %v3673_v43  ;;  %v3882_v40 = vcombine.high %v384_v35, %v388_v36  ;;  %v376_v5 = vld [vmem:[#allocation2 + $0x850] sm:$0xff]  ;;  %v3643_v52 = vcombine.low %v145_v37, %v149_v38  ;;  %v133_v57 = vld [vmem:[#allocation2 + $0xb8] sm:$0xff] }
 0x131   :  { %v2587_v61 = vpop.f32.mrf.mxu1  ;;  %v2547_v23 = vpop.f32.mrf.mxu0  ;;  %2918 = vmatprep.subr.bf16.mxu0 %v3922_v48  ;;  %v380_v43 = vld [vmem:[#allocation2 + $0x870] sm:$0xff]  ;;  %v3881_v48 = vcombine.low %v384_v35, %v388_v36  ;;  %v3627_v4 = vcombine.low %v129_v56, %v133_v57  ;;  %v229_v35 = vld [vmem:[#allocation2 + $0x3b8] sm:$0xff] }
 0x132   :  { %2908 = vmatpush2.bf16.msra.mxu1 %v3801_v47  ;;  %v141_v47 = vld [vmem:[#allocation2 + $0xf8] sm:$0xff]  ;;  %v3873_v58 = vcombine.low %v376_v5, %v380_v43  ;;  %v488_v23 = vld [vmem:[#allocation2 + $0xbd0] sm:$0xff] }
 0x133   :  { %v2588_v2 = vpop.f32.mrf.mxu1  ;;  %2973 = vmatprep.subr.bf16.mxu1 %v3994_v54  ;;  %2869 = vmatmul.mubr.bf16.vlgmr.msra.gmra.mxu0 %v4318_v30  ;;  %v3636_v53 = vcombine.high %v137_v46, %v141_v47  ;;  %v368_v54 = vld [vmem:[#allocation2 + $0x810] sm:$0xff]  ;;  %v3635_v59 = vcombine.low %v137_v46, %v141_v47 }
 0x134   :  { %2919 = vmatpush1.bf16.msra.mxu0 %v3921_v62  ;;  %2950 = vmatprep.mubr.bf16.mxu0 %v4327_v41  ;;  %v3866_v61 = vcombine.high %v368_v54, %v372_v55  ;;  %v3628_v62 = vcombine.high %v129_v56, %v133_v57  ;;  %v125_v2 = vld [vmem:[#allocation2 + $0x78] sm:$0xff] }
 0x135   :  { %2910 = vmatmul.mubr.bf16.vlgmr.msra.gmra.mxu1 %v4324_v34  ;;  %v4365_v7 = vpop.f32.mrf.mxu1  ;;  %2920 = vmatprep.subr.bf16.mxu0 %v3914_v1  ;;  %v121_v1 = vld [vmem:[#allocation2 + $0x58] sm:$0xff] }
 0x136   :  { %2974 = vmatpush1.bf16.msra.mxu1 %v3993_v0  ;;  %2991 = vmatprep.mubr.bf16.mxu1 %v4245_v45  ;;  %v492_v0 = vld [vmem:[#allocation2 + $0xbf0] sm:$0xff] }
 0x137   :  { %v4367_v10 = vpop.f32.mrf.mxu1  ;;  %3000 = vmatprep.subr.bf16.mxu1 %v3668_v3  ;;  %v3865_v3 = vcombine.low %v368_v54, %v372_v55  ;;  %v3986_v6 = vcombine.high %v488_v23, %v492_v0  ;;  %v3985_v15 = vcombine.low %v488_v23, %v492_v0  ;;  %v213_v54 = vld [vmem:[#allocation2 + $0x338] sm:$0xff] }
 0x138   :  { %2921 = vmatpush1.bf16.msra.mxu0 %v3913_v8  ;;  %v3620_v8 = vcombine.high %v121_v1, %v125_v2  ;;  %v205_v23 = vld [vmem:[#allocation2 + $0x2f8] sm:$0xff] }
 0x139   :  { %v2669_v17 = vpop.f32.mrf.mxu1  ;;  %2922 = vmatprep.subr.bf16.mxu0 %v3906_v9  ;;  %v480_v9 = vld [vmem:[#allocation2 + $0xb90] sm:$0xff] }
 0x13a   :  { %v3619_v17 = vcombine.low %v121_v1, %v125_v2  ;;  %v3977_v26 = vcombine.low %v480_v9, %v484_v12 }
 0x13b   :  { %v2670_v22 = vpop.f32.mrf.mxu1 }
 0x13c   :  { %2923 = vmatpush1.bf16.msra.mxu0 %v3905_v18  ;;  %v3978_v18 = vcombine.high %v480_v9, %v484_v12  ;;  %v476_v22 = vld [vmem:[#allocation2 + $0xb70] sm:$0xff]  ;;  %v197_v9 = vld [vmem:[#allocation2 + $0x2b8] sm:$0xff] }
 0x13d   :  { %3999 = vmatmul.mubr.msk.bf16.vlgmr.msra.gmra.mxu1 %vm2504_vm0, %v4333_v51  ;;  %2924 = vmatprep.subr.bf16.mxu0 %v3898_v20  ;;  %v472_v20 = vld [vmem:[#allocation2 + $0xb50] sm:$0xff] }
 0x13e   :  { %3001 = vmatpush1.bf16.msra.mxu1 %v3667_v19  ;;  %3032 = vmatprep.mubr.bf16.mxu1 %v4302_v11  ;;  %v3874_v11 = vcombine.high %v376_v5, %v380_v43  ;;  %v3612_v19 = vcombine.high %v113_v13, %v117_v14  ;;  %v3970_v28 = vcombine.high %v472_v20, %v476_v22  ;;  %v221_v5 = vld [vmem:[#allocation2 + $0x378] sm:$0xff] }
 0x13f   :  { %3002 = vmatprep.subr.bf16.mxu1 %v3660_v24  ;;  %v233_v24 = vld [vmem:[#allocation2 + $0x3d8] sm:$0xff]  ;;  %v3969_v36 = vcombine.low %v472_v20, %v476_v22 }
 0x140   :  { %2925 = vmatpush1.bf16.msra.mxu0 %v3897_v29  ;;  %v3732_v29 = vcombine.high %v233_v24, %v237_v25  ;;  %v3731_v37 = vcombine.low %v233_v24, %v237_v25  ;;  %v185_v20 = vld [vmem:[#allocation2 + $0x258] sm:$0xff] }
 0x141   :  { %2926 = vmatprep.subr.bf16.mxu0 %v3890_v32  ;;  %v468_v32 = vld [vmem:[#allocation2 + $0xb30] sm:$0xff]  ;;  %v189_v22 = vld [vmem:[#allocation2 + $0x278] sm:$0xff] }
 0x142   :  { %3003 = vmatpush1.bf16.msra.mxu1 %v3659_v31  ;;  %v464_v31 = vld [vmem:[#allocation2 + $0xb10] sm:$0xff] }
 0x143   :  { %3004 = vmatprep.subr.bf16.mxu1 %v3652_v33  ;;  %v225_v33 = vld [vmem:[#allocation2 + $0x398] sm:$0xff]  ;;  %v3962_v38 = vcombine.high %v464_v31, %v468_v32  ;;  %v3961_v43 = vcombine.low %v464_v31, %v468_v32  ;;  %v3684_v32 = vcombine.high %v185_v20, %v189_v22 }
 0x144   :  { %2927 = vmatpush1.bf16.msra.mxu0 %v3889_v39  ;;  %v3724_v39 = vcombine.high %v225_v33, %v229_v35  ;;  %v3723_v46 = vcombine.low %v225_v33, %v229_v35  ;;  %v289_v33 = vld [vmem:[#allocation2 + $0x598] sm:$0xff] }
 0x145   :  { %2928 = vmatprep.subr.bf16.mxu0 %v3882_v40  ;;  %v460_v40 = vld [vmem:[#allocation2 + $0xaf0] sm:$0xff]  ;;  %v293_v35 = vld [vmem:[#allocation2 + $0x5b8] sm:$0xff] }
 0x146   :  { %3005 = vmatpush1.bf16.msra.mxu1 %v3651_v63  ;;  %v456_v63 = vld [vmem:[#allocation2 + $0xad0] sm:$0xff] }
 0x147   :  { %3006 = vmatprep.subr.bf16.mxu1 %v3644_v42  ;;  %v217_v42 = vld [vmem:[#allocation2 + $0x358] sm:$0xff]  ;;  %v3954_v47 = vcombine.high %v456_v63, %v460_v40  ;;  %v3953_v55 = vcombine.low %v456_v63, %v460_v40  ;;  %v3683_v40 = vcombine.low %v185_v20, %v189_v22 }
 0x148   :  { %2929 = vmatpush1.bf16.msra.mxu0 %v3881_v48  ;;  %v3716_v48 = vcombine.high %v217_v42, %v221_v5  ;;  %v3715_v56 = vcombine.low %v217_v42, %v221_v5  ;;  %v285_v5 = vld [vmem:[#allocation2 + $0x578] sm:$0xff] }
 0x149   :  { %2930 = vmatprep.subr.bf16.mxu0 %v3874_v11  ;;  %v452_v11 = vld [vmem:[#allocation2 + $0xab0] sm:$0xff]  ;;  %v249_v20 = vld [vmem:[#allocation2 + $0x458] sm:$0xff] }
 0x14a   :  { %3007 = vmatpush1.bf16.msra.mxu1 %v3643_v52  ;;  %v448_v52 = vld [vmem:[#allocation2 + $0xa90] sm:$0xff]  ;;  %v253_v22 = vld [vmem:[#allocation2 + $0x478] sm:$0xff] }
 0x14b   :  { %3008 = vmatprep.subr.bf16.mxu1 %v3636_v53  ;;  %v209_v53 = vld [vmem:[#allocation2 + $0x318] sm:$0xff]  ;;  %v3946_v57 = vcombine.high %v448_v52, %v452_v11  ;;  %v3945_v0 = vcombine.low %v448_v52, %v452_v11 }
 0x14c   :  { %2931 = vmatpush1.bf16.msra.mxu0 %v3873_v58  ;;  %v3708_v58 = vcombine.high %v209_v53, %v213_v54  ;;  %v3707_v1 = vcombine.low %v209_v53, %v213_v54  ;;  %v273_v54 = vld [vmem:[#allocation2 + $0x518] sm:$0xff] }
 0x14d   :  { %2932 = vmatprep.subr.bf16.mxu0 %v3866_v61  ;;  %v444_v61 = vld [vmem:[#allocation2 + $0xa70] sm:$0xff] }
 0x14e   :  { %3009 = vmatpush1.bf16.msra.mxu1 %v3635_v59  ;;  %v440_v59 = vld [vmem:[#allocation2 + $0xa50] sm:$0xff] }
 0x14f   :  { %3010 = vmatprep.subr.bf16.mxu1 %v3628_v62  ;;  %v201_v62 = vld [vmem:[#allocation2 + $0x2d8] sm:$0xff]  ;;  %v3938_v2 = vcombine.high %v440_v59, %v444_v61  ;;  %v3937_v12 = vcombine.low %v440_v59, %v444_v61 }
 0x150   :  { %2933 = vmatpush1.bf16.msra.mxu0 %v3865_v3  ;;  %v3700_v3 = vcombine.high %v201_v62, %v205_v23  ;;  %v3699_v13 = vcombine.low %v201_v62, %v205_v23 }
 0x151   :  { %2934 = vmatprep.subr.bf16.mxu0 %v3986_v6  ;;  %v436_v6 = vld [vmem:[#allocation2 + $0xa30] sm:$0xff] }
 0x152   :  { %3011 = vmatpush1.bf16.msra.mxu1 %v3627_v4  ;;  %v432_v4 = vld [vmem:[#allocation2 + $0xa10] sm:$0xff] }
 0x153   :  { %3012 = vmatprep.subr.bf16.mxu1 %v3620_v8  ;;  %v193_v8 = vld [vmem:[#allocation2 + $0x298] sm:$0xff]  ;;  %v3930_v14 = vcombine.high %v432_v4, %v436_v6  ;;  %v3929_v25 = vcombine.low %v432_v4, %v436_v6 }
 0x154   :  { %2935 = vmatpush2.bf16.msra.mxu0 %v3985_v15  ;;  %v3692_v15 = vcombine.high %v193_v8, %v197_v9 }
 0x155   :  { %2936 = vmatprep.subr.bf16.mxu0 %v3978_v18  ;;  %v301_v18 = vld [vmem:[#allocation2 + $0x5f8] sm:$0xff] }
 0x156   :  { %3013 = vmatpush1.bf16.msra.mxu1 %v3619_v17  ;;  %v297_v17 = vld [vmem:[#allocation2 + $0x5d8] sm:$0xff] }
 0x157   :  { %3014 = vmatprep.subr.bf16.mxu1 %v3612_v19 }
 0x158   :  { %2937 = vmatpush2.bf16.msra.mxu0 %v3977_v26 }
 0x159   :  { %2938 = vmatprep.subr.bf16.mxu0 %v3970_v28  ;;  %v3796_v28 = vcombine.high %v297_v17, %v301_v18 }
 0x15a   :  { %3015 = vmatpush1.bf16.msra.mxu1 %v3611_v27  ;;  %v3691_v27 = vcombine.low %v193_v8, %v197_v9 }
 0x15b   :  { %3016 = vmatprep.subr.bf16.mxu1 %v3732_v29 }
 0x15c   :  { %2939 = vmatpush2.bf16.msra.mxu0 %v3969_v36 }
 0x15d   :  { %2940 = vmatprep.subr.bf16.mxu0 %v3962_v38  ;;  %v181_v38 = vld [vmem:[#allocation2 + $0x238] sm:$0xff] }
 0x15e   :  { %3017 = vmatpush2.bf16.msra.mxu1 %v3731_v37  ;;  %v177_v37 = vld [vmem:[#allocation2 + $0x218] sm:$0xff] }
 0x15f   :  { %3018 = vmatprep.subr.bf16.mxu1 %v3724_v39  ;;  %v3795_v39 = vcombine.low %v297_v17, %v301_v18  ;;  %v3676_v42 = vcombine.high %v177_v37, %v181_v38 }
 0x160   :  { %2941 = vmatpush2.bf16.msra.mxu0 %v3961_v43  ;;  %v425_v43 = vld [vmem:[#allocation2 + $0x9d8] sm:$0xff] }
 0x161   :  { %2942 = vmatprep.subr.bf16.mxu0 %v3954_v47 }
 0x162   :  { %3019 = vmatpush2.bf16.msra.mxu1 %v3723_v46  ;;  %v429_v46 = vld [vmem:[#allocation2 + $0x9f8] sm:$0xff] }
 0x163   :  { %3020 = vmatprep.subr.bf16.mxu1 %v3716_v48  ;;  %v3675_v48 = vcombine.low %v177_v37, %v181_v38  ;;  %v3924_v53 = vcombine.high %v425_v43, %v429_v46  ;;  %v3923_v61 = vcombine.low %v425_v43, %v429_v46 }
 0x164   :  { %2943 = vmatpush2.bf16.msra.mxu0 %v3953_v55  ;;  %v277_v55 = vld [vmem:[#allocation2 + $0x538] sm:$0xff] }
 0x165   :  { %2944 = vmatprep.subr.bf16.mxu0 %v3946_v57  ;;  %v421_v57 = vld [vmem:[#allocation2 + $0x9b8] sm:$0xff]  ;;  %v3772_v62 = vcombine.high %v273_v54, %v277_v55  ;;  %v3771_v4 = vcombine.low %v273_v54, %v277_v55 }
 0x166   :  { %3021 = vmatpush2.bf16.msra.mxu1 %v3715_v56  ;;  %v417_v56 = vld [vmem:[#allocation2 + $0x998] sm:$0xff] }
 0x167   :  { %3022 = vmatprep.subr.bf16.mxu1 %v3708_v58  ;;  %v3916_v23 = vcombine.high %v417_v56, %v421_v57  ;;  %v3915_v6 = vcombine.low %v417_v56, %v421_v57 }
 0x168   :  { %2945 = vmatpush2.bf16.msra.mxu0 %v3945_v0  ;;  %v265_v0 = vld [vmem:[#allocation2 + $0x4d8] sm:$0xff] }
 0x169   :  { %2946 = vmatprep.subr.bf16.mxu0 %v3938_v2  ;;  %v409_v2 = vld [vmem:[#allocation2 + $0x958] sm:$0xff] }
 0x16a   :  { %3023 = vmatpush2.bf16.msra.mxu1 %v3707_v1  ;;  %v269_v1 = vld [vmem:[#allocation2 + $0x4f8] sm:$0xff] }
 0x16b   :  { %3024 = vmatprep.subr.bf16.mxu1 %v3700_v3  ;;  %v2624_v19 = vpop.f32.mrf.mxu0  ;;  %v413_v3 = vld [vmem:[#allocation2 + $0x978] sm:$0xff]  ;;  %v3764_v8 = vcombine.high %v265_v0, %v269_v1  ;;  %v3763_v17 = vcombine.low %v265_v0, %v269_v1 }
 0x16c   :  { %v2625_v24 = vadd.f32 %v2624_v19, %v4359_v49  ;;  %2947 = vmatpush2.bf16.msra.mxu0 %v3937_v12  ;;  %v3908_v9 = vcombine.high %v409_v2, %v413_v3  ;;  %v257_v12 = vld [vmem:[#allocation2 + $0x498] sm:$0xff]  ;;  %v3907_v18 = vcombine.low %v409_v2, %v413_v3 }
 0x16d   :  { %v2626_v26 = vpop.f32.mrf.mxu0  ;;  %2948 = vmatprep.subr.bf16.mxu0 %v3930_v14  ;;  %v401_v14 = vld [vmem:[#allocation2 + $0x918] sm:$0xff] }
 0x16e   :  { %3025 = vmatpush2.bf16.msra.mxu1 %v3699_v13  ;;  %v4376_v29 = vadd.f32 %v4365_v7, %v2625_v24  ;;  %v2627_v31 = vadd.f32 %v2626_v26, %v4361_v60  ;;  %v3788_v7 = vcombine.high %v289_v33, %v293_v35  ;;  %v281_v60 = vld [vmem:[#allocation2 + $0x558] sm:$0xff] }
 0x16f   :  { %3026 = vmatprep.subr.bf16.mxu1 %v3692_v15  ;;  %v2628_v36 = vpop.f32.mrf.mxu0  ;;  %v3780_v52 = vcombine.high %v281_v60, %v285_v5  ;;  %v3779_v59 = vcombine.low %v281_v60, %v285_v5  ;;  %v261_v13 = vld [vmem:[#allocation2 + $0x4b8] sm:$0xff] }
 0x170   :  { %v4380_v49 = vadd.f32 %v4367_v10, %v2627_v31  ;;  %2949 = vmatpush2.bf16.msra.mxu0 %v3929_v25  ;;  %v3787_v10 = vcombine.low %v289_v33, %v293_v35  ;;  %v405_v15 = vld [vmem:[#allocation2 + $0x938] sm:$0xff]  ;;  %v3755_v26 = vcombine.low %v257_v12, %v261_v13  ;;  %v3747_v36 = vcombine.low %v249_v20, %v253_v22 }
 0x171   :  { %v2629_v63 = vpop.f32.mrf.mxu0  ;;  %3041 = vmatprep.subr.bf16.mxu0 %v3796_v28  ;;  %v3900_v19 = vcombine.high %v401_v14, %v405_v15  ;;  %v393_v24 = vld [vmem:[#allocation2 + $0x8d8] sm:$0xff] }
 0x172   :  { %3027 = vmatpush2.bf16.msra.mxu1 %v3691_v27  ;;  %v397_v25 = vld [vmem:[#allocation2 + $0x8f8] sm:$0xff]  ;;  %v3899_v27 = vcombine.low %v401_v14, %v405_v15 }
 0x173   :  { %3028 = vmatprep.subr.bf16.mxu1 %v3684_v32  ;;  %2951 = vmatmul.mubr.bf16.vlgmr.msra.gmra.mxu0 %v4340_v50  ;;  %v3892_v28 = vcombine.high %v393_v24, %v397_v25  ;;  %v241_v31 = vld [vmem:[#allocation2 + $0x418] sm:$0xff]  ;;  %v3891_v37 = vcombine.low %v393_v24, %v397_v25 }
 0x174   :  { %3042 = vmatpush1.bf16.msra.mxu0 %v3795_v39  ;;  %3073 = vmatprep.mubr.bf16.mxu0 %v4307_v16  ;;  %v245_v32 = vld [vmem:[#allocation2 + $0x438] sm:$0xff] }
 0x175   :  { %v4383_v47 = vpop.f32.mrf.mxu1  ;;  %3043 = vmatprep.subr.bf16.mxu0 %v3788_v7  ;;  %v385_v33 = vld [vmem:[#allocation2 + $0x898] sm:$0xff]  ;;  %v3740_v38 = vcombine.high %v241_v31, %v245_v32  ;;  %v3739_v60 = vcombine.low %v241_v31, %v245_v32 }
 0x176   :  { %3029 = vmatpush2.bf16.msra.mxu1 %v3683_v40  ;;  %v389_v35 = vld [vmem:[#allocation2 + $0x8b8] sm:$0xff] }
 0x177   :  { %v4386_v11 = vpop.f32.mrf.mxu1  ;;  %3030 = vmatprep.subr.bf16.mxu1 %v3676_v42  ;;  %v3884_v39 = vcombine.high %v385_v33, %v389_v35  ;;  %v361_v63 = vld [vmem:[#allocation2 + $0x7d8] sm:$0xff]  ;;  %v3883_v5 = vcombine.low %v385_v33, %v389_v35 }
 0x178   :  { %3044 = vmatpush1.bf16.msra.mxu0 %v3787_v10  ;;  %v365_v40 = vld [vmem:[#allocation2 + $0x7f8] sm:$0xff] }
 0x179   :  { %v2710_v58 = vpop.f32.mrf.mxu1  ;;  %3045 = vmatprep.subr.bf16.mxu0 %v3780_v52  ;;  %v377_v7 = vld [vmem:[#allocation2 + $0x858] sm:$0xff]  ;;  %v3860_v43 = vcombine.high %v361_v63, %v365_v40  ;;  %v3859_v54 = vcombine.low %v361_v63, %v365_v40 }
 0x17a   :  { %3031 = vmatpush2.bf16.msra.mxu1 %v3675_v48  ;;  %v381_v42 = vld [vmem:[#allocation2 + $0x878] sm:$0xff] }
 0x17b   :  { %v2711_v16 = vpop.f32.mrf.mxu1  ;;  %3082 = vmatprep.subr.bf16.mxu1 %v3924_v53  ;;  %v3876_v46 = vcombine.high %v377_v7, %v381_v42  ;;  %v353_v10 = vld [vmem:[#allocation2 + $0x798] sm:$0xff]  ;;  %v3875_v55 = vcombine.low %v377_v7, %v381_v42 }
 0x17c   :  { %3046 = vmatpush1.bf16.msra.mxu0 %v3779_v59  ;;  %v357_v48 = vld [vmem:[#allocation2 + $0x7b8] sm:$0xff] }
 0x17d   :  { %3033 = vmatmul.mubr.bf16.vlgmr.msra.gmra.mxu1 %v4318_v30  ;;  %3047 = vmatprep.subr.bf16.mxu0 %v3772_v62  ;;  %v3756_v30 = vcombine.high %v257_v12, %v261_v13  ;;  %v369_v52 = vld [vmem:[#allocation2 + $0x818] sm:$0xff]  ;;  %v3852_v56 = vcombine.high %v353_v10, %v357_v48  ;;  %v3851_v16 = vcombine.low %v353_v10, %v357_v48 }
 0x17e   :  { %3083 = vmatpush1.bf16.msra.mxu1 %v3923_v61  ;;  %3114 = vmatprep.mubr.bf16.mxu1 %v4327_v41  ;;  %v3748_v41 = vcombine.high %v249_v20, %v253_v22  ;;  %v373_v53 = vld [vmem:[#allocation2 + $0x838] sm:$0xff] }
 0x17f   :  { %3084 = vmatprep.subr.bf16.mxu1 %v3916_v23  ;;  %v3868_v57 = vcombine.high %v369_v52, %v373_v53  ;;  %v345_v58 = vld [vmem:[#allocation2 + $0x758] sm:$0xff]  ;;  %v3867_v23 = vcombine.low %v369_v52, %v373_v53 }
 0x180   :  { %3048 = vmatpush1.bf16.msra.mxu0 %v3771_v4  ;;  %v349_v59 = vld [vmem:[#allocation2 + $0x778] sm:$0xff] }
 0x181   :  { %3049 = vmatprep.subr.bf16.mxu0 %v3764_v8  ;;  %v489_v61 = vld [vmem:[#allocation2 + $0xbd8] sm:$0xff]  ;;  %v3844_v0 = vcombine.high %v345_v58, %v349_v59  ;;  %v3843_v8 = vcombine.low %v345_v58, %v349_v59 }
 0x182   :  { %3085 = vmatpush1.bf16.msra.mxu1 %v3915_v6  ;;  %v493_v62 = vld [vmem:[#allocation2 + $0xbf8] sm:$0xff] }
 0x183   :  { %3086 = vmatprep.subr.bf16.mxu1 %v3908_v9  ;;  %v3988_v1 = vcombine.high %v489_v61, %v493_v62  ;;  %v337_v2 = vld [vmem:[#allocation2 + $0x718] sm:$0xff]  ;;  %v3987_v9 = vcombine.low %v489_v61, %v493_v62 }
 0x184   :  { %3050 = vmatpush1.bf16.msra.mxu0 %v3763_v17  ;;  %v341_v3 = vld [vmem:[#allocation2 + $0x738] sm:$0xff] }
 0x185   :  { %3051 = vmatprep.subr.bf16.mxu0 %v3756_v30  ;;  %v481_v4 = vld [vmem:[#allocation2 + $0xb98] sm:$0xff]  ;;  %v3836_v12 = vcombine.high %v337_v2, %v341_v3  ;;  %v3835_v30 = vcombine.low %v337_v2, %v341_v3 }
 0x186   :  { %3087 = vmatpush1.bf16.msra.mxu1 %v3907_v18  ;;  %v485_v6 = vld [vmem:[#allocation2 + $0xbb8] sm:$0xff] }
 0x187   :  { %3088 = vmatprep.subr.bf16.mxu1 %v3900_v19  ;;  %v3980_v13 = vcombine.high %v481_v4, %v485_v6  ;;  %v329_v14 = vld [vmem:[#allocation2 + $0x6d8] sm:$0xff]  ;;  %v3979_v19 = vcombine.low %v481_v4, %v485_v6 }
 0x188   :  { %3052 = vmatpush1.bf16.msra.mxu0 %v3755_v26  ;;  %v333_v15 = vld [vmem:[#allocation2 + $0x6f8] sm:$0xff] }
 0x189   :  { %3053 = vmatprep.subr.bf16.mxu0 %v3748_v41  ;;  %v473_v17 = vld [vmem:[#allocation2 + $0xb58] sm:$0xff]  ;;  %v3828_v20 = vcombine.high %v329_v14, %v333_v15  ;;  %v3827_v41 = vcombine.low %v329_v14, %v333_v15 }
 0x18a   :  { %3089 = vmatpush1.bf16.msra.mxu1 %v3899_v27  ;;  %v477_v18 = vld [vmem:[#allocation2 + $0xb78] sm:$0xff] }
 0x18b   :  { %3090 = vmatprep.subr.bf16.mxu1 %v3892_v28  ;;  %v3972_v22 = vcombine.high %v473_v17, %v477_v18  ;;  %v321_v24 = vld [vmem:[#allocation2 + $0x698] sm:$0xff]  ;;  %v3971_v28 = vcombine.low %v473_v17, %v477_v18 }
 0x18c   :  { %3054 = vmatpush1.bf16.msra.mxu0 %v3747_v36  ;;  %v325_v25 = vld [vmem:[#allocation2 + $0x6b8] sm:$0xff] }
 0x18d   :  { %3055 = vmatprep.subr.bf16.mxu0 %v3740_v38  ;;  %v465_v26 = vld [vmem:[#allocation2 + $0xb18] sm:$0xff]  ;;  %v3820_v31 = vcombine.high %v321_v24, %v325_v25  ;;  %v3819_v38 = vcombine.low %v321_v24, %v325_v25 }
 0x18e   :  { %3091 = vmatpush1.bf16.msra.mxu1 %v3891_v37  ;;  %v469_v27 = vld [vmem:[#allocation2 + $0xb38] sm:$0xff] }
 0x18f   :  { %3092 = vmatprep.subr.bf16.mxu1 %v3884_v39  ;;  %v3964_v32 = vcombine.high %v465_v26, %v469_v27  ;;  %v313_v33 = vld [vmem:[#allocation2 + $0x658] sm:$0xff]  ;;  %v3963_v39 = vcombine.low %v465_v26, %v469_v27  ;;  %v3202_v26 = vld [vmem:[%s4818_s3 + $0xf0] sm:$0xff] }
 0x190   :  { %3056 = vmatpush1.bf16.msra.mxu0 %v3739_v60  ;;  %v317_v35 = vld [vmem:[#allocation2 + $0x678] sm:$0xff] }
 0x191   :  { %3057 = vmatprep.subr.bf16.mxu0 %v3860_v43  ;;  %v457_v36 = vld [vmem:[#allocation2 + $0xad8] sm:$0xff]  ;;  %v3812_v63 = vcombine.high %v313_v33, %v317_v35  ;;  %v3811_v43 = vcombine.low %v313_v33, %v317_v35  ;;  %v3217_v33 = vld [vmem:[%s4818_s3 + $0x168] sm:$0xff]  ;;  %v3200_v35 = vld [vmem:[%s4818_s3 + $0xe0] sm:$0xff] }
 0x192   :  { %3093 = vmatpush1.bf16.msra.mxu1 %v3883_v5  ;;  %v461_v37 = vld [vmem:[#allocation2 + $0xaf8] sm:$0xff] }
 0x193   :  { %3094 = vmatprep.subr.bf16.mxu1 %v3876_v46  ;;  %v3956_v40 = vcombine.high %v457_v36, %v461_v37  ;;  %v305_v7 = vld [vmem:[#allocation2 + $0x618] sm:$0xff]  ;;  %v3955_v46 = vcombine.low %v457_v36, %v461_v37  ;;  %v3232_v36 = vld [vmem:[%s4818_s3 + $0x1e0] sm:$0xff] }
 0x194   :  { %3058 = vmatpush2.bf16.msra.mxu0 %v3859_v54  ;;  %v309_v42 = vld [vmem:[#allocation2 + $0x638] sm:$0xff]  ;;  %v518_v54 = vsub.s32 3, %v4286_v44  ;;  %v3184_v37 = vld [vmem:[%s4818_s3 + $0x60] sm:$0xff] }
 0x195   :  { %3059 = vmatprep.subr.bf16.mxu0 %v3852_v56  ;;  %v449_v60 = vld [vmem:[#allocation2 + $0xa98] sm:$0xff]  ;;  %v3804_v10 = vcombine.high %v305_v7, %v309_v42  ;;  %v3803_v58 = vcombine.low %v305_v7, %v309_v42  ;;  %v3198_v42 = vld [vmem:[%s4818_s3 + $0xd0] sm:$0xff] }
 0x196   :  { %3095 = vmatpush1.bf16.msra.mxu1 %v3875_v55  ;;  %v453_v5 = vld [vmem:[#allocation2 + $0xab8] sm:$0xff] }
 0x197   :  { %3096 = vmatprep.subr.bf16.mxu1 %v3868_v57  ;;  %v3948_v48 = vcombine.high %v449_v60, %v453_v5  ;;  %v497_v52 = vld [vmem:[#allocation2 + $0xc18] sm:$0xff]  ;;  %v3947_v61 = vcombine.low %v449_v60, %v453_v5  ;;  %v3230_v60 = vld [vmem:[%s4818_s3 + $0x1d0] sm:$0xff] }
 0x198   :  { %3060 = vmatpush2.bf16.msra.mxu0 %v3851_v16  ;;  %v501_v53 = vld [vmem:[#allocation2 + $0xc38] sm:$0xff]  ;;  %v3182_v5 = vld [vmem:[%s4818_s3 + $0x50] sm:$0xff] }
 0x199   :  { %3061 = vmatprep.subr.bf16.mxu0 %v3844_v0  ;;  %v441_v56 = vld [vmem:[#allocation2 + $0xa58] sm:$0xff]  ;;  %v3996_v62 = vcombine.high %v497_v52, %v501_v53  ;;  %v3995_v3 = vcombine.low %v497_v52, %v501_v53  ;;  %v514_v52 = vsub.s32 2, %v4286_v44  ;;  %v3213_v53 = vld [vmem:[%s4818_s3 + $0x148] sm:$0xff] }
 0x19a   :  { %3097 = vmatpush1.bf16.msra.mxu1 %v3867_v23  ;;  %v445_v57 = vld [vmem:[#allocation2 + $0xa78] sm:$0xff]  ;;  %v519_v23 = vrot.slane %v4354_v21, %v518_v54  ;;  %v3196_v54 = vld [vmem:[%s4818_s3 + $0xc0] sm:$0xff] }
 0x19b   :  { %3098 = vmatprep.subr.bf16.mxu1 %v3988_v1  ;;  %v3940_v16 = vcombine.high %v441_v56, %v445_v57  ;;  %v433_v1 = vld [vmem:[#allocation2 + $0xa18] sm:$0xff]  ;;  %v3939_v6 = vcombine.low %v441_v56, %v445_v57  ;;  %v3228_v56 = vld [vmem:[%s4818_s3 + $0x1c0] sm:$0xff] }
 0x19c   :  { %3062 = vmatpush2.bf16.msra.mxu0 %v3843_v8  ;;  %v437_v2 = vld [vmem:[#allocation2 + $0xa38] sm:$0xff]  ;;  %v3180_v57 = vld [vmem:[%s4818_s3 + $0x40] sm:$0xff] }
 0x19d   :  { %3063 = vmatprep.subr.bf16.mxu0 %v3836_v12  ;;  %v3932_v8 = vcombine.high %v433_v1, %v437_v2  ;;  %v2709_v12 = vadd.f32 %v4386_v11, %v519_v23  ;;  %v3931_v17 = vcombine.low %v433_v1, %v437_v2  ;;  %v3219_v25 = vld [vmem:[%s4818_s3 + $0x178] sm:$0xff]  ;;  %v3194_v1 = vld [vmem:[%s4818_s3 + $0xb0] sm:$0xff] }
 0x19e   :  { %3099 = vmatpush2.bf16.msra.mxu1 %v3987_v9  ;;  %v3203_v9 = vld [vmem:[%s4818_s3 + $0xf8] sm:$0xff]  ;;  %v3226_v2 = vld [vmem:[%s4818_s3 + $0x1b0] sm:$0xff] }
 0x19f   :  { %3100 = vmatprep.subr.bf16.mxu1 %v3980_v13  ;;  %v3215_v7 = vld [vmem:[%s4818_s3 + $0x158] sm:$0xff] }
 0x1a0   :  { %3064 = vmatpush2.bf16.msra.mxu0 %v3835_v30 }
 0x1a1   :  { %3065 = vmatprep.subr.bf16.mxu0 %v3828_v20 }
 0x1a2   :  { %3101 = vmatpush2.bf16.msra.mxu1 %v3979_v19 }
 0x1a3   :  { %3102 = vmatprep.subr.bf16.mxu1 %v3972_v22 }
 0x1a4   :  { %3066 = vmatpush2.bf16.msra.mxu0 %v3827_v41  ;;  %v3234_v41 = vld [vmem:[%s4818_s3 + $0x1f0] sm:$0xff] }
 0x1a5   :  { %3067 = vmatprep.subr.bf16.mxu0 %v3820_v31  ;;  %v3186_v31 = vld [vmem:[%s4818_s3 + $0x70] sm:$0xff] }
 0x1a6   :  { %3103 = vmatpush2.bf16.msra.mxu1 %v3971_v28  ;;  %v3165_v28 = vmax.f32 %v4380_v49, 0.0  ;;  %v3185_v49 = vld [vmem:[%s4818_s3 + $0x68] sm:$0xff] }
 0x1a7   :  { %3104 = vmatprep.subr.bf16.mxu1 %v3964_v32  ;;  %v3218_v32 = vld [vmem:[%s4818_s3 + $0x170] sm:$0xff] }
 0x1a8   :  { %3068 = vmatpush2.bf16.msra.mxu0 %v3819_v38  ;;  %v3216_v38 = vld [vmem:[%s4818_s3 + $0x160] sm:$0xff] }
 0x1a9   :  { %3069 = vmatprep.subr.bf16.mxu0 %v3812_v63  ;;  %v3231_v63 = vld [vmem:[%s4818_s3 + $0x1d8] sm:$0xff] }
 0x1aa   :  { %3105 = vmatpush2.bf16.msra.mxu1 %v3963_v39  ;;  %v3199_v39 = vld [vmem:[%s4818_s3 + $0xd8] sm:$0xff] }
 0x1ab   :  { %3106 = vmatprep.subr.bf16.mxu1 %v3956_v40  ;;  %v4391_v55 = vpop.f32.mrf.mxu0  ;;  %v3183_v40 = vld [vmem:[%s4818_s3 + $0x58] sm:$0xff] }
 0x1ac   :  { %3070 = vmatpush2.bf16.msra.mxu0 %v3811_v43  ;;  %v3214_v43 = vld [vmem:[%s4818_s3 + $0x150] sm:$0xff] }
 0x1ad   :  { %v2749_v59 = vpop.f32.mrf.mxu0  ;;  %3071 = vmatprep.subr.bf16.mxu0 %v3804_v10  ;;  %v3229_v10 = vld [vmem:[%s4818_s3 + $0x1c8] sm:$0xff] }
 0x1ae   :  { %3107 = vmatpush2.bf16.msra.mxu1 %v3955_v46  ;;  %v2750_v14 = vadd.f32 %v2749_v59, %v2709_v12  ;;  %v3197_v46 = vld [vmem:[%s4818_s3 + $0xc8] sm:$0xff]  ;;  %v3195_v59 = vld [vmem:[%s4818_s3 + $0xb8] sm:$0xff] }
 0x1af   :  { %3108 = vmatprep.subr.bf16.mxu1 %v3948_v48  ;;  %v2751_v0 = vpop.f32.mrf.mxu0  ;;  %v3181_v48 = vld [vmem:[%s4818_s3 + $0x48] sm:$0xff] }
 0x1b0   :  { %3072 = vmatpush2.bf16.msra.mxu0 %v3803_v58  ;;  %v3212_v58 = vld [vmem:[%s4818_s3 + $0x140] sm:$0xff]  ;;  %v3211_v0 = vld [vmem:[%s4818_s3 + $0x138] sm:$0xff] }
 0x1b1   :  { %v2752_v4 = vpop.f32.mrf.mxu0  ;;  %3137 = vmatprep.subr.bf16.mxu0 %v3996_v62  ;;  %v3179_v62 = vld [vmem:[%s4818_s3 + $0x38] sm:$0xff] }
 0x1b2   :  { %3109 = vmatpush2.bf16.msra.mxu1 %v3947_v61  ;;  %v3227_v61 = vld [vmem:[%s4818_s3 + $0x1b8] sm:$0xff]  ;;  %v3210_v4 = vld [vmem:[%s4818_s3 + $0x130] sm:$0xff] }
 0x1b3   :  { %3110 = vmatprep.subr.bf16.mxu1 %v3940_v16  ;;  %3074 = vmatmul.mubr.bf16.vlgmr.msra.gmra.mxu0 %v4324_v34  ;;  %v4399_v21 = vpop.f32.mrf.mxu0  ;;  %v3235_v34 = vld [vmem:[%s4818_s3 + $0x1f8] sm:$0xff]  ;;  %v4511_v16 = vld [vmem:[#allocation5] sm:$0xff] }
 0x1b4   :  { %3138 = vmatpush1.bf16.msra.mxu0 %v3995_v3  ;;  %3155 = vmatprep.mubr.bf16.mxu0 %v4245_v45  ;;  %v3187_v45 = vld [vmem:[%s4818_s3 + $0x78] sm:$0xff]  ;;  %v515_v23 = vrot.slane %v4511_v16, %v514_v52  ;;  %v3178_v3 = vld [vmem:[%s4818_s3 + $0x30] sm:$0xff] }
 0x1b5   :  { %v4401_v13 = vpop.f32.mrf.mxu1  ;;  %v2831_v15 = vpop.f32.mrf.mxu0  ;;  %4002 = vmatprep.subr.mxu0 %v3203_v9  ;;  %v3177_v9 = vld [vmem:[%s4818_s3 + $0x28] sm:$0xff]  ;;  %v3247_v52 = vld [vmem:[%s4818_s3 + $0x258] sm:$0xff] }
 0x1b6   :  { %3111 = vmatpush2.bf16.msra.mxu1 %v3939_v6  ;;  %v3193_v6 = vld [vmem:[%s4818_s3 + $0xa8] sm:$0xff]  ;;  %v2707_v12 = vadd.f32 %v4383_v47, %v515_v23  ;;  %v3176_v47 = vld [vmem:[%s4818_s3 + $0x20] sm:$0xff] }
 0x1b7   :  { %v2790_v18 = vpop.f32.mrf.mxu1  ;;  %3112 = vmatprep.subr.bf16.mxu1 %v3932_v8  ;;  %v2833_v19 = vpop.f32.mrf.mxu0  ;;  %v3225_v8 = vld [vmem:[%s4818_s3 + $0x1a8] sm:$0xff] }
 0x1b8   :  { %v2791_v30 = vadd.f32 %v2790_v18, %v2750_v14  ;;  %v3209_v14 = vld [vmem:[%s4818_s3 + $0x128] sm:$0xff]  ;;  %v2748_v18 = vadd.f32 %v4391_v55, %v2707_v12  ;;  %v3191_v19 = vld [vmem:[%s4818_s3 + $0x98] sm:$0xff] }
 0x1b9   :  { %v2792_v11 = vpop.f32.mrf.mxu1  ;;  %v2834_v22 = vpop.f32.mrf.mxu0  ;;  %v3175_v55 = vld [vmem:[%s4818_s3 + $0x18] sm:$0xff]  ;;  %v3293_v23 = vld [vmem:[%s4818_s3 + $0x3c8] sm:$0xff] }
 0x1ba   :  { %v2832_v20 = vadd.f32 %v2831_v15, %v2791_v30  ;;  %3113 = vmatpush2.bf16.msra.mxu1 %v3931_v17  ;;  %v3192_v15 = vld [vmem:[%s4818_s3 + $0xa0] sm:$0xff]  ;;  %v2789_v11 = vadd.f32 %v4401_v13, %v2748_v18  ;;  %v3190_v22 = vld [vmem:[%s4818_s3 + $0x90] sm:$0xff]  ;;  %v3257_v12 = vld [vmem:[%s4818_s3 + $0x2a8] sm:$0xff] }
 0x1bb   :  { %v2793_v24 = vpop.f32.mrf.mxu1  ;;  %4037 = vmatprep.subr.mxu1 %v3235_v34  ;;  %4000 = vmatmul.mubr.msk.bf16.vlgmr.msra.gmra.mxu0 %vm2504_vm0, %v4333_v51  ;;  %v3201_v51 = vld [vmem:[%s4818_s3 + $0xe8] sm:$0xff]  ;;  %v3224_v17 = vld [vmem:[%s4818_s3 + $0x1a0] sm:$0xff]  ;;  %v3223_v34 = vld [vmem:[%s4818_s3 + $0x198] sm:$0xff] }
 0x1bc   :  { %v3167_v27 = vmax.f32 %v2832_v20, 0.0  ;;  %4003 = vmatpush3.msra.mxu0 %v3187_v45  ;;  %3371 = vmatprep.mubr.f32.mxu0 %v3165_v28  ;;  %v3208_v30 = vld [vmem:[%s4818_s3 + $0x120] sm:$0xff]  ;;  %v3207_v20 = vld [vmem:[%s4818_s3 + $0x118] sm:$0xff]  ;;  %v3222_v45 = vld [vmem:[%s4818_s3 + $0x190] sm:$0xff] }
 0x1bd   :  { %3115 = vmatmul.mubr.bf16.vlgmr.msra.gmra.mxu1 %v4340_v50  ;;  %4004 = vmatprep.subr.mxu0 %v3202_v26  ;;  %v3233_v50 = vld [vmem:[%s4818_s3 + $0x1e8] sm:$0xff]  ;;  %v3174_v13 = vld [vmem:[%s4818_s3 + $0x10] sm:$0xff] }
 0x1be   :  { %4038 = vmatpush3.msra.mxu1 %v3219_v25  ;;  %3441 = vmatprep.mubr.f32.mxu1 %v3167_v27  ;;  %v3206_v24 = vld [vmem:[%s4818_s3 + $0x110] sm:$0xff]  ;;  %v3189_v25 = vld [vmem:[%s4818_s3 + $0x88] sm:$0xff] }
 0x1bf   :  { %4039 = vmatprep.subr.mxu1 %v3234_v41  ;;  %4005 = vmatpush3.msra.mxu0 %v3186_v31  ;;  %v3221_v26 = vld [vmem:[%s4818_s3 + $0x188] sm:$0xff]  ;;  %v2830_v41 = vadd.f32 %v4399_v21, %v2789_v11  ;;  %v3188_v31 = vld [vmem:[%s4818_s3 + $0x80] sm:$0xff]  ;;  %v3291_v11 = vld [vmem:[%s4818_s3 + $0x3b8] sm:$0xff] }
 0x1c0   :  { %4040 = vmatpush3.msra.mxu1 %v3218_v32  ;;  %4006 = vmatprep.subr.mxu0 %v3201_v51  ;;  %v3173_v27 = vld [vmem:[%s4818_s3 + $0x8] sm:$0xff]  ;;  %v3220_v32 = vld [vmem:[%s4818_s3 + $0x180] sm:$0xff] }
 0x1c1   :  { %4041 = vmatprep.subr.mxu1 %v3233_v50  ;;  %4007 = vmatpush3.msra.mxu0 %v3185_v49  ;;  %v3205_v28 = vld [vmem:[%s4818_s3 + $0x108] sm:$0xff]  ;;  %v3172_v21 = vld [vmem:[%s4818_s3] sm:$0xff]  ;;  %v3164_v50 = vmax.f32 %v4376_v29, 0.0  ;;  %v3267_v49 = vld [vmem:[%s4818_s3 + $0x2f8] sm:$0xff] }
 0x1c2   :  { %4042 = vmatpush3.msra.mxu1 %v3217_v33  ;;  %4008 = vmatprep.subr.mxu0 %v3200_v35  ;;  %v3204_v51 = vld [vmem:[%s4818_s3 + $0x100] sm:$0xff]  ;;  %v3166_v33 = vmax.f32 %v2830_v41, 0.0  ;;  %v3251_v35 = vld [vmem:[%s4818_s3 + $0x278] sm:$0xff]  ;;  %v3266_v29 = vld [vmem:[%s4818_s3 + $0x2f0] sm:$0xff] }
 0x1c3   :  { %4043 = vmatprep.subr.mxu1 %v3232_v36  ;;  %4009 = vmatpush3.msra.mxu0 %v3184_v37  ;;  %v3299_v36 = vld [vmem:[%s4818_s3 + $0x3f8] sm:$0xff]  ;;  %v3274_v41 = vld [vmem:[%s4818_s3 + $0x330] sm:$0xff] }
 0x1c4   :  { %4044 = vmatpush3.msra.mxu1 %v3216_v38  ;;  %4010 = vmatprep.subr.mxu0 %v3199_v39  ;;  %v3283_v37 = vld [vmem:[%s4818_s3 + $0x378] sm:$0xff]  ;;  %v3250_v38 = vld [vmem:[%s4818_s3 + $0x270] sm:$0xff] }
 0x1c5   :  { %4045 = vmatprep.subr.mxu1 %v3231_v63  ;;  %4011 = vmatpush3.msra.mxu0 %v3183_v40  ;;  %v3298_v39 = vld [vmem:[%s4818_s3 + $0x3f0] sm:$0xff]  ;;  %v3265_v63 = vld [vmem:[%s4818_s3 + $0x2e8] sm:$0xff] }
 0x1c6   :  { %4046 = vmatpush3.msra.mxu1 %v3215_v7  ;;  %4012 = vmatprep.subr.mxu0 %v3198_v42  ;;  %v3282_v40 = vld [vmem:[%s4818_s3 + $0x370] sm:$0xff]  ;;  %v3249_v7 = vld [vmem:[%s4818_s3 + $0x268] sm:$0xff] }
 0x1c7   :  { %4047 = vmatprep.subr.mxu1 %v3230_v60  ;;  %4013 = vmatpush3.msra.mxu0 %v3182_v5  ;;  %v3297_v42 = vld [vmem:[%s4818_s3 + $0x3e8] sm:$0xff]  ;;  %v3264_v60 = vld [vmem:[%s4818_s3 + $0x2e0] sm:$0xff] }
 0x1c8   :  { %4048 = vmatpush3.msra.mxu1 %v3214_v43  ;;  %4014 = vmatprep.subr.mxu0 %v3197_v46  ;;  %v3281_v5 = vld [vmem:[%s4818_s3 + $0x368] sm:$0xff]  ;;  %v3248_v43 = vld [vmem:[%s4818_s3 + $0x260] sm:$0xff] }
 0x1c9   :  { %4049 = vmatprep.subr.mxu1 %v3229_v10  ;;  %4015 = vmatpush3.msra.mxu0 %v3181_v48  ;;  %v3296_v46 = vld [vmem:[%s4818_s3 + $0x3e0] sm:$0xff]  ;;  %v3263_v10 = vld [vmem:[%s4818_s3 + $0x2d8] sm:$0xff] }
 0x1ca   :  { %4050 = vmatpush3.msra.mxu1 %v3213_v53  ;;  %4016 = vmatprep.subr.mxu0 %v3196_v54  ;;  %v3280_v48 = vld [vmem:[%s4818_s3 + $0x360] sm:$0xff]  ;;  %v3295_v53 = vld [vmem:[%s4818_s3 + $0x3d8] sm:$0xff]  ;;  %v3262_v54 = vld [vmem:[%s4818_s3 + $0x2d0] sm:$0xff] }
 0x1cb   :  { %4051 = vmatprep.subr.mxu1 %v3228_v56  ;;  %4017 = vmatpush3.msra.mxu0 %v3180_v57  ;;  %v3279_v56 = vld [vmem:[%s4818_s3 + $0x358] sm:$0xff]  ;;  %v3246_v57 = vld [vmem:[%s4818_s3 + $0x250] sm:$0xff] }
 0x1cc   :  { %4052 = vmatpush3.msra.mxu1 %v3212_v58  ;;  %4018 = vmatprep.subr.mxu0 %v3195_v59  ;;  %v3294_v58 = vld [vmem:[%s4818_s3 + $0x3d0] sm:$0xff]  ;;  %v3261_v59 = vld [vmem:[%s4818_s3 + $0x2c8] sm:$0xff] }
 0x1cd   :  { %4053 = vmatprep.subr.mxu1 %v3227_v61  ;;  %4019 = vmatpush3.msra.mxu0 %v3179_v62  ;;  %v3278_v61 = vld [vmem:[%s4818_s3 + $0x350] sm:$0xff]  ;;  %v3245_v62 = vld [vmem:[%s4818_s3 + $0x248] sm:$0xff] }
 0x1ce   :  { %4054 = vmatpush3.msra.mxu1 %v3211_v0  ;;  %4020 = vmatprep.subr.mxu0 %v3194_v1  ;;  %v3260_v0 = vld [vmem:[%s4818_s3 + $0x2c0] sm:$0xff]  ;;  %v3277_v1 = vld [vmem:[%s4818_s3 + $0x348] sm:$0xff] }
 0x1cf   :  { %4055 = vmatprep.subr.mxu1 %v3226_v2  ;;  %4021 = vmatpush3.msra.mxu0 %v3178_v3  ;;  %v3244_v2 = vld [vmem:[%s4818_s3 + $0x240] sm:$0xff] }
 0x1d0   :  { %4056 = vmatpush3.msra.mxu1 %v3210_v4  ;;  %4022 = vmatprep.subr.mxu0 %v3193_v6  ;;  %v3292_v3 = vld [vmem:[%s4818_s3 + $0x3c0] sm:$0xff]  ;;  %v3259_v4 = vld [vmem:[%s4818_s3 + $0x2b8] sm:$0xff] }
 0x1d1   :  { %4057 = vmatprep.subr.mxu1 %v3225_v8  ;;  %4023 = vmatpush3.msra.mxu0 %v3177_v9  ;;  %v3243_v6 = vld [vmem:[%s4818_s3 + $0x238] sm:$0xff]  ;;  %v3258_v8 = vld [vmem:[%s4818_s3 + $0x2b0] sm:$0xff] }
 0x1d2   :  { %4058 = vmatpush3.msra.mxu1 %v3209_v14  ;;  %4024 = vmatprep.subr.mxu0 %v3192_v15  ;;  %v3242_v9 = vld [vmem:[%s4818_s3 + $0x230] sm:$0xff]  ;;  %v3241_v14 = vld [vmem:[%s4818_s3 + $0x228] sm:$0xff]  ;;  %v3256_v15 = vld [vmem:[%s4818_s3 + $0x2a0] sm:$0xff] }
 0x1d3   :  { %4059 = vmatprep.subr.mxu1 %v3224_v17  ;;  %4025 = vmatpush3.msra.mxu0 %v3176_v47  ;;  %v3240_v17 = vld [vmem:[%s4818_s3 + $0x220] sm:$0xff]  ;;  %v3255_v47 = vld [vmem:[%s4818_s3 + $0x298] sm:$0xff] }
 0x1d4   :  { %4060 = vmatpush3.msra.mxu1 %v3208_v30  ;;  %4026 = vmatprep.subr.mxu0 %v3191_v19  ;;  %v3239_v30 = vld [vmem:[%s4818_s3 + $0x218] sm:$0xff] }
 0x1d5   :  { %4061 = vmatprep.subr.mxu1 %v3223_v34  ;;  %4027 = vmatpush3.msra.mxu0 %v3175_v55  ;;  %v3254_v34 = vld [vmem:[%s4818_s3 + $0x290] sm:$0xff]  ;;  %v3276_v55 = vld [vmem:[%s4818_s3 + $0x340] sm:$0xff] }
 0x1d6   :  { %4062 = vmatpush3.msra.mxu1 %v3207_v20  ;;  %4028 = vmatprep.subr.mxu0 %v3190_v22  ;;  %v3238_v22 = vld [vmem:[%s4818_s3 + $0x210] sm:$0xff] }
 0x1d7   :  { %4063 = vmatprep.subr.mxu1 %v3222_v45  ;;  %4029 = vmatpush3.msra.mxu0 %v3174_v13  ;;  %v3253_v13 = vld [vmem:[%s4818_s3 + $0x288] sm:$0xff] }
 0x1d8   :  { %4064 = vmatpush3.msra.mxu1 %v3206_v24  ;;  %4030 = vmatprep.subr.mxu0 %v3189_v25  ;;  %v3275_v24 = vld [vmem:[%s4818_s3 + $0x338] sm:$0xff]  ;;  %v3290_v25 = vld [vmem:[%s4818_s3 + $0x3b0] sm:$0xff] }
 0x1d9   :  { %4065 = vmatprep.subr.mxu1 %v3221_v26  ;;  %4031 = vmatpush3.msra.mxu0 %v3173_v27  ;;  %v3237_v27 = vld [vmem:[%s4818_s3 + $0x208] sm:$0xff] }
 0x1da   :  { %4066 = vmatpush3.msra.mxu1 %v3205_v28  ;;  %4032 = vmatprep.subr.mxu0 %v3188_v31  ;;  %v3289_v28 = vld [vmem:[%s4818_s3 + $0x3a8] sm:$0xff] }
 0x1db   :  { %4067 = vmatprep.subr.mxu1 %v3220_v32  ;;  %4033 = vmatpush3.msra.mxu0 %v3172_v21  ;;  %v3252_v32 = vld [vmem:[%s4818_s3 + $0x280] sm:$0xff] }
 0x1dc   :  { %4068 = vmatpush3.msra.mxu1 %v3204_v51  ;;  %3372 = vmatmul.mubr.f32.vlgmr.msra.gmra.mxu0 %v3164_v50  ;;  %v3236_v51 = vld [vmem:[%s4818_s3 + $0x200] sm:$0xff]  ;;  %v3273_v50 = vld [vmem:[%s4818_s3 + $0x328] sm:$0xff] }
 0x1dd   :  { %3442 = vmatmul.mubr.f32.vlgmr.msra.gmra.mxu1 %v3166_v33  ;;  %4072 = vmatprep.subr.mxu0 %v3267_v49 }
 0x1de   :  { %4073 = vmatpush3.msra.mxu0 %v3251_v35  ;;  %4107 = vmatprep.subr.mxu1 %v3299_v36  ;;  %v3288_v35 = vld [vmem:[%s4818_s3 + $0x3a0] sm:$0xff] }
 0x1df   :  { %4074 = vmatprep.subr.mxu0 %v3266_v29  ;;  %4108 = vmatpush3.msra.mxu1 %v3283_v37  ;;  %v3272_v36 = vld [vmem:[%s4818_s3 + $0x320] sm:$0xff]  ;;  %v3287_v37 = vld [vmem:[%s4818_s3 + $0x398] sm:$0xff] }
 0x1e0   :  { %4075 = vmatpush3.msra.mxu0 %v3250_v38  ;;  %4109 = vmatprep.subr.mxu1 %v3298_v39  ;;  %v3271_v38 = vld [vmem:[%s4818_s3 + $0x318] sm:$0xff] }
 0x1e1   :  { %4076 = vmatprep.subr.mxu0 %v3265_v63  ;;  %4110 = vmatpush3.msra.mxu1 %v3282_v40  ;;  %v3286_v63 = vld [vmem:[%s4818_s3 + $0x390] sm:$0xff] }
 0x1e2   :  { %4077 = vmatpush3.msra.mxu0 %v3249_v7  ;;  %4111 = vmatprep.subr.mxu1 %v3297_v42  ;;  %v3270_v40 = vld [vmem:[%s4818_s3 + $0x310] sm:$0xff]  ;;  %v3285_v42 = vld [vmem:[%s4818_s3 + $0x388] sm:$0xff] }
 0x1e3   :  { %4078 = vmatprep.subr.mxu0 %v3264_v60  ;;  %4112 = vmatpush3.msra.mxu1 %v3281_v5  ;;  %v3269_v60 = vld [vmem:[%s4818_s3 + $0x308] sm:$0xff]  ;;  %v3284_v5 = vld [vmem:[%s4818_s3 + $0x380] sm:$0xff] }
 0x1e4   :  { %4079 = vmatpush3.msra.mxu0 %v3248_v43  ;;  %4113 = vmatprep.subr.mxu1 %v3296_v46  ;;  %v3268_v43 = vld [vmem:[%s4818_s3 + $0x300] sm:$0xff]  ;;  %v522_v46 = vsub.s32 4, %v4286_v44  ;;  %s4246_s3 = smov [#allocation8]  }
 0x1e5   :  { %4080 = vmatprep.subr.mxu0 %v3263_v10  ;;  %4114 = vmatpush3.msra.mxu1 %v3280_v48  ;;  %v526_v10 = vsub.s32 5, %v4286_v44  ;;  %s3595_s9 = sshll.u32 %s4246_s3, 4  ;;  %s3596_s9 = int_to_ptr.vmem [resolvable:$true] %s3595_s9 }
 0x1e6   :  { %4081 = vmatpush3.msra.mxu0 %v3247_v52  ;;  %4115 = vmatprep.subr.mxu1 %v3295_v53  ;;  %v523_v48 = vrot.slane %v4511_v16, %v522_v46  ;;  %s4213_s1 = scalar_lea.vmem %s3596_s9, 32  ;;  %p4218_p2 = scmp.lt.s32.totalorder %s3596_s9, %s3596_s9 }
 0x1e7   :  { %4082 = vmatprep.subr.mxu0 %v3262_v54  ;;  %4116 = vmatpush3.msra.mxu1 %v3279_v56  ;;  %v527_v52 = vrot.slane %v4511_v16, %v526_v10  ;;  %p4214_p1 = scmp.ne.s32.totalorder %s3596_s9, %s4213_s1  ;;  %p4219_p3 = scmp.lt.s32.totalorder %s4213_s1, %s4213_s1 }
 0x1e8   :  { %4083 = vmatpush3.msra.mxu0 %v3246_v57  ;;  %4117 = vmatprep.subr.mxu1 %v3294_v58 }
 0x1e9   :  { %4084 = vmatprep.subr.mxu0 %v3261_v59  ;;  %4118 = vmatpush3.msra.mxu1 %v3278_v61  ;;  %p4220_p4 = por %p4219_p3, %p4218_p2 }
 0x1ea   :  { %4085 = vmatpush3.msra.mxu0 %v3245_v62  ;;  %4119 = vmatprep.subr.mxu1 %v3293_v23 }
 0x1eb   :  { %4086 = vmatprep.subr.mxu0 %v3260_v0  ;;  %4120 = vmatpush3.msra.mxu1 %v3277_v1  ;;  %p4221_p5 = pnand %p4220_p4, %p4214_p1 }
 0x1ec   :  { %4087 = vmatpush3.msra.mxu0 %v3244_v2  ;;  %4121 = vmatprep.subr.mxu1 %v3292_v3 }
 0x1ed   :  { %4088 = vmatprep.subr.mxu0 %v3259_v4  ;;  %4122 = vmatpush3.msra.mxu1 %v3276_v55 }
 0x1ee   :  { %4089 = vmatpush3.msra.mxu0 %v3243_v6  ;;  %4123 = vmatprep.subr.mxu1 %v3291_v11 }
 0x1ef   :  { %4090 = vmatprep.subr.mxu0 %v3258_v8  ;;  %4124 = vmatpush3.msra.mxu1 %v3275_v24 }
 0x1f0   :  { %4091 = vmatpush3.msra.mxu0 %v3242_v9  ;;  %4125 = vmatprep.subr.mxu1 %v3290_v25 }
 0x1f1   :  { %4092 = vmatprep.subr.mxu0 %v3257_v12  ;;  %4126 = vmatpush3.msra.mxu1 %v3274_v41 }
 0x1f2   :  { %4093 = vmatpush3.msra.mxu0 %v3241_v14  ;;  %4127 = vmatprep.subr.mxu1 %v3289_v28  ;;  %v530_v14 = vsub.s32 6, %v4286_v44 }
 0x1f3   :  { %v4726_v18 = vpop.f32.mrf.mxu0  ;;  %4094 = vmatprep.subr.mxu0 %v3256_v15  ;;  %4128 = vmatpush3.msra.mxu1 %v3273_v50  ;;  %v534_v15 = vsub.s32 7, %v4286_v44 }
 0x1f4   :  { %4095 = vmatpush3.msra.mxu0 %v3240_v17  ;;  %4129 = vmatprep.subr.mxu1 %v3288_v35  ;;  %v2871_v53 = vadd.f32 %v4726_v18, %v523_v48 }
 0x1f5   :  { %v4731_v19 = vpop.f32.mrf.mxu1  ;;  %v2872_v20 = vpop.f32.mrf.mxu0  ;;  %4096 = vmatprep.subr.mxu0 %v3255_v47  ;;  %4130 = vmatpush3.msra.mxu1 %v3272_v36  ;;  %v531_v47 = vrot.slane %v4511_v16, %v530_v14 }
 0x1f6   :  { %4097 = vmatpush3.msra.mxu0 %v3239_v30  ;;  %4131 = vmatprep.subr.mxu1 %v3287_v37  ;;  %v2873_v54 = vadd.f32 %v2872_v20, %v527_v52  ;;  %v2912_v56 = vadd.f32 %v4731_v19, %v2871_v53  ;;  %v535_v30 = vrot.slane %v4511_v16, %v534_v15 }
 0x1f7   :  { %v2913_v45 = vpop.f32.mrf.mxu1  ;;  %v2874_v26 = vpop.f32.mrf.mxu0  ;;  %4098 = vmatprep.subr.mxu0 %v3254_v34  ;;  %4132 = vmatpush3.msra.mxu1 %v3271_v38 }
 0x1f8   :  { %4099 = vmatpush3.msra.mxu0 %v3238_v22  ;;  %4133 = vmatprep.subr.mxu1 %v3286_v63  ;;  %v2914_v58 = vadd.f32 %v2913_v45, %v2873_v54 }
 0x1f9   :  { %v2915_v31 = vpop.f32.mrf.mxu1  ;;  %v2875_v21 = vpop.f32.mrf.mxu0  ;;  %4100 = vmatprep.subr.mxu0 %v3253_v13  ;;  %4134 = vmatpush3.msra.mxu1 %v3270_v40 }
 0x1fa   :  { %4101 = vmatpush3.msra.mxu0 %v3237_v27  ;;  %4135 = vmatprep.subr.mxu1 %v3285_v42 }
 0x1fb   :  { %v2916_v49 = vpop.f32.mrf.mxu1  ;;  %4102 = vmatprep.subr.mxu0 %v3252_v32  ;;  %4136 = vmatpush3.msra.mxu1 %v3269_v60 }
 0x1fc   :  { %4103 = vmatpush3.msra.mxu0 %v3236_v51  ;;  %4137 = vmatprep.subr.mxu1 %v3284_v5 }
 0x1fd   :  { %v2993_v33 = vpop.f32.mrf.mxu1  ;;  %4138 = vmatpush3.msra.mxu1 %v3268_v43 }
 0x1ff   :  { %v2995_v29 = vpop.f32.mrf.mxu1 }
 0x201   :  { %v2997_v39 = vpop.f32.mrf.mxu1 }
 0x203   :  { %v2998_v7 = vpop.f32.mrf.mxu1 }
 0x233   :  { %v2952_v57 = vpop.f32.mrf.mxu0 }
 0x234   :  { %v2953_v59 = vadd.f32 %v2952_v57, %v2912_v56 }
 0x235   :  { %v2954_v61 = vpop.f32.mrf.mxu0 }
 0x236   :  { %v2955_v62 = vadd.f32 %v2954_v61, %v2914_v58  ;;  %v2994_v23 = vadd.f32 %v2993_v33, %v2953_v59 }
 0x237   :  { %v2956_v0 = vpop.f32.mrf.mxu0 }
 0x238   :  { %v2996_v1 = vadd.f32 %v2995_v29, %v2955_v62  ;;  %v3168_v4 = vmax.f32 %v2994_v23, 0.0  ;;  %v4001_v29 = vld [vmem:[#allocation7] ss:$0 sm:$0xff] }
 0x239   :  { %v2957_v2 = vpop.f32.mrf.mxu0 }
 0x23a   :  { %v3169_v3 = vmax.f32 %v2996_v1, 0.0 }
 0x23c   :  { %3511 = vmatprep.mubr.f32.mxu0 %v3169_v3 }
 0x23d   :  { %v3034_v6 = vpop.f32.mrf.mxu1  ;;  %3512 = vmatmul.mubr.f32.vlgmr.msra.gmra.mxu0 %v3168_v4 }
 0x23e   :  { %v3035_v34 = vadd.f32 %v3034_v6, %v531_v47 }
 0x23f   :  { %v3036_v8 = vpop.f32.mrf.mxu1 }
 0x240   :  { %v3037_v11 = vadd.f32 %v3036_v8, %v535_v30 }
 0x241   :  { %v3038_v9 = vpop.f32.mrf.mxu1 }
 0x243   :  { %v3039_v12 = vpop.f32.mrf.mxu1 }
 0x273   :  { %v3075_v17 = vpop.f32.mrf.mxu0 }
 0x274   :  { %v3076_v20 = vadd.f32 %v3075_v17, %v3035_v34 }
 0x275   :  { %v3077_v18 = vpop.f32.mrf.mxu0 }
 0x276   :  { %v3078_v13 = vadd.f32 %v3077_v18, %v3037_v11 }
 0x277   :  { %v3079_v19 = vpop.f32.mrf.mxu0 }
 0x279   :  { %v3080_v55 = vpop.f32.mrf.mxu0 }
 0x27b   :  { %v3157_v22 = vpop.f32.mrf.mxu0 }
 0x27d   :  { %v3116_v45 = vpop.f32.mrf.mxu1  ;;  %v3159_v25 = vpop.f32.mrf.mxu0 }
 0x27e   :  { %v3117_v24 = vadd.f32 %v3116_v45, %v3076_v20 }
 0x27f   :  { %v3118_v26 = vpop.f32.mrf.mxu1  ;;  %v3161_v41 = vpop.f32.mrf.mxu0 }
 0x280   :  { %v3119_v27 = vadd.f32 %v3118_v26, %v3078_v13  ;;  %v3158_v44 = vadd.f32 %v3157_v22, %v3117_v24 }
 0x281   :  { %v3120_v28 = vpop.f32.mrf.mxu1  ;;  %v3162_v32 = vpop.f32.mrf.mxu0 }
 0x282   :  { %v3160_v31 = vadd.f32 %v3159_v25, %v3119_v27  ;;  %v3170_v16 = vmax.f32 %v3158_v44, 0.0 }
 0x283   :  { %v3121_v21 = vpop.f32.mrf.mxu1 }
 0x284   :  { %v3171_v51 = vmax.f32 %v3160_v31, 0.0 }
 0x286   :  { %3581 = vmatprep.mubr.f32.mxu1 %v3171_v51 }
 0x287   :  { %3582 = vmatmul.mubr.f32.vlgmr.msra.gmra.mxu1 %v3170_v16 }
 0x29c   :  { %v4034_v50 = vpop.f32.mrf.mxu0 }
 0x29d   :  { %v4069_v33 = vpop.f32.mrf.mxu1 }
 0x29e   :  { %v4035_v49 = vpop.f32.mrf.mxu0 }
 0x29f   :  { %v4036_v36 = vadd.f32 %v4035_v49, %v4034_v50  ;;  %v4070_v37 = vpop.f32.mrf.mxu1 }
 0x2a0   :  { %v4071_v63 = vadd.f32 %v4070_v37, %v4069_v33 }
 0x2a1   :  { %v3374_v39 = vadd.f32 %v4036_v36, %v4001_v29 }
 0x2a3   :  { %v3444_v42 = vadd.f32 %v4071_v63, %v3374_v39 }
 0x2fd   :  { %v4104_v35 = vpop.f32.mrf.mxu0 }
 0x2ff   :  { %v4105_v38 = vpop.f32.mrf.mxu0 }
 0x300   :  { %v4106_v40 = vadd.f32 %v4105_v38, %v4104_v35 }
 0x302   :  { %v3514_v5 = vadd.f32 %v4106_v40, %v3444_v42 }
 0x347   :  { %v4139_v7 = vpop.f32.mrf.mxu1 }
 0x349   :  { %v4140_v60 = vpop.f32.mrf.mxu1 }
 0x34a   :  { %v4141_v43 = vadd.f32 %v4140_v60, %v4139_v7 }
 0x34c   :  { %v3584_v46 = vadd.f32 %v4141_v43, %v3514_v5 }
 0x34e   :  { %3588 = vst.msk [vmem:[#allocation8] sm:$0x3] %vm3587_vm1, %v3584_v46 }
 0x34f   :  { %4224 = shalt.err (!%p4221_p5)
}
 0x350   :  { %3598 = dma.vmem_to_hbm [thread:$0]  %s3596_s9, 32, %s4820_s5, [#allocation4]  }
 0x351   :  { %4237 = dma.done.wait [#allocation4], 32  }
 0x352   :  { %4238 = vsyncadd [#allocation4], 4294967264 }
 0x353   :  { %3602 = vsyncpa [#allocation3], 1 }
 0x354   :  { %3603 = vsyncpa [#allocation6], 1 }
 0x355   :  { %3604 = vsyncpa [#allocation4], 1 }

</bundles_post_ra>
